<compile_context>
chip_gen: v6e
topology: v6e:2x2x1
jax: 0.10.0
libtpu: 0.0.40
codegen_flags: <defaults>
</compile_context>

<pallas_src>
import functools

import jax
import jax.numpy as jnp
import numpy as np
from jax.experimental import pallas as pl
from jax.experimental.pallas import tpu as pltpu


# ---------------------------------------------------------------------------
# Pallas kernel: per (batch, row-tile) fused 1x1 conv (+BN folded) on x and y,
# separable bilinear upsampling of y_q and y, channel-sum similarity, sigmoid,
# and the blended output.
# ---------------------------------------------------------------------------
def _pagfm_kernel(x_ref, y_ref, wx_ref, bx_ref, wy_ref, by_ref, mh_ref, mw_ref,
                  o_ref, xk_scr, yq_scr, *, with_relu):
    cmid, cin = wx_ref.shape          # 1x1 conv: (mid_channels, in_channels)
    th, hy = mh_ref.shape             # output-row tile size x input rows
    wys, wxs = mw_ref.shape           # input width x output width

    wx = wx_ref[...]                  # (cmid, cin)  native dtype (BN folded)
    wy = wy_ref[...]                  # (cmid, cin)
    bx = bx_ref[...]                  # (cmid, 1)    float32 (folded BN bias)
    by = by_ref[...]                  # (cmid, 1)
    mh = mh_ref[...]                  # (th, hy)     height interp rows (tile)
    mw = mw_ref[...]                  # (wys, wxs)   width interp (transposed)

    # --- f_x: 1x1 conv + BN on the x tile, one image row at a time ----------
    # (every matmul stays 2-D with lane = W; no tiled-dim reshapes)
    for t in range(th):
        x_row = x_ref[0, :, t, :]                                   # (cin, wxs)
        if with_relu:
            x_row = jnp.maximum(x_row, 0)
        xk_scr[:, t, :] = (
            jnp.dot(wx, x_row, preferred_element_type=jnp.float32) + bx)

    # --- f_y: 1x1 conv + BN at low resolution -------------------------------
    for r in range(hy):
        y_row = y_ref[0, :, r, :]                                   # (cin, wys)
        if with_relu:
            y_row = jnp.maximum(y_row, 0)
        yq_scr[:, r, :] = (
            jnp.dot(wy, y_row, preferred_element_type=jnp.float32) + by)

    # --- separable bilinear upsample (align_corners=False): height, then width
    def upsample(plane):                                            # (hy, wys)
        t = jnp.dot(mh, plane, preferred_element_type=jnp.float32)  # (th, wys)
        return jnp.dot(t, mw, preferred_element_type=jnp.float32)   # (th, wxs)

    # --- similarity logits: sum_m x_k[m] * upsample(y_q[m]) -----------------
    sim_logit = xk_scr[0] * upsample(yq_scr[0])
    for m in range(1, cmid):
        sim_logit = sim_logit + xk_scr[m] * upsample(yq_scr[m])
    sim = jax.nn.sigmoid(sim_logit)                                 # (th, wxs)

    # --- blended output: out = x + sim * (y_up - x) --------------------------
    for c in range(cin):
        x_c = x_ref[0, c].astype(jnp.float32)                       # (th, wxs)
        y_c = y_ref[0, c]                                           # (hy, wys)
        if with_relu:
            x_c = jnp.maximum(x_c, 0)
            y_c = jnp.maximum(y_c, 0)
        y_up_c = upsample(y_c)
        o_ref[0, c] = (x_c + sim * (y_up_c - x_c)).astype(o_ref.dtype)

    # TODO(synk): with_channel=True variant (extra 1x1 conv + BN producing a
    # per-channel sim map) is not implemented; default PagFM config only.


# ---------------------------------------------------------------------------
# Plain-Python / JAX glue
# ---------------------------------------------------------------------------
def _interp_matrix(out_size, in_size):
    """Bilinear interpolation matrix, PyTorch align_corners=False semantics."""
    i = np.arange(out_size, dtype=np.float64)
    src = (i + 0.5) * (in_size / out_size) - 0.5
    src = np.clip(src, 0.0, in_size - 1)
    i0 = np.floor(src).astype(np.int64)
    i1 = np.minimum(i0 + 1, in_size - 1)
    frac = src - i0
    m = np.zeros((out_size, in_size), np.float64)
    rows = np.arange(out_size)
    m[rows, i0] += 1.0 - frac
    m[rows, i1] += frac
    return m.astype(np.float32)


def _fold_conv_bn(w, gamma, beta, running_mean, running_var, eps=1e-5):
    """Fold eval-mode BatchNorm into a 1x1 conv.  w: (Cmid, Cin)."""
    scale = gamma / jnp.sqrt(running_var + eps)              # (Cmid,)
    w_eff = w * scale[:, None]                               # (Cmid, Cin)
    b_eff = (beta - running_mean * scale)[:, None]           # (Cmid, 1)
    return w_eff.astype(jnp.float32), b_eff.astype(jnp.float32)


def _pick_row_block(hx, wxs, cin, itemsize, budget_bytes=2 * 1024 * 1024):
    """Largest multiple-of-8 divisor of Hx whose x-tile fits the per-buffer budget."""
    max_rows = max(8, budget_bytes // max(1, wxs * cin * itemsize))
    best = None
    for cand in range(8, hx + 1, 8):
        if hx % cand == 0 and cand <= max_rows:
            best = cand
    return best if best is not None else hx


def pagfm_forward(x, y, params, *, with_relu=False, row_block=None):
    """x: (N, Cin, Hx, Wx), y: (N, Cin, Hy, Wy) -> (N, Cin, Hx, Wx)."""
    n, cin, hx, wxs = x.shape
    ny, cin_y, hy, wys = y.shape
    assert ny == n and cin_y == cin
    cmid = params["wx"].shape[0]

    if row_block is None:
        th = _pick_row_block(hx, wxs, cin, jnp.dtype(x.dtype).itemsize)
    else:
        th = int(row_block)
    if hx % th != 0 or not (th % 8 == 0 or th == hx):
        raise ValueError(f"row_block={th} must divide Hx={hx} and be a "
                         f"multiple of 8 (or equal Hx)")

    # Fold BN into the 1x1 convs; cast weights / interp matrices to the input
    # dtype so the MXU sees native-precision operands (f32 accumulation).
    wx_eff, bx_eff = _fold_conv_bn(params["wx"], params["gx"], params["bx"],
                                   params["mx"], params["vx"])
    wy_eff, by_eff = _fold_conv_bn(params["wy"], params["gy"], params["by"],
                                   params["my"], params["vy"])
    wx_eff = wx_eff.astype(x.dtype)
    wy_eff = wy_eff.astype(x.dtype)

    mh = jnp.asarray(_interp_matrix(hx, hy), dtype=x.dtype)      # (Hx, Hy)
    mw = jnp.asarray(_interp_matrix(wxs, wys).T, dtype=x.dtype)  # (Wy, Wx)

    kernel = functools.partial(_pagfm_kernel, with_relu=with_relu)
    grid = (n, hx // th)

    out = pl.pallas_call(
        kernel,
        out_shape=jax.ShapeDtypeStruct((n, cin, hx, wxs), x.dtype),
        grid=grid,
        in_specs=[
            pl.BlockSpec((1, cin, th, wxs), lambda b, i: (b, 0, i, 0)),   # x
            pl.BlockSpec((1, cin, hy, wys), lambda b, i: (b, 0, 0, 0)),   # y
            pl.BlockSpec((cmid, cin), lambda b, i: (0, 0)),               # Wx
            pl.BlockSpec((cmid, 1), lambda b, i: (0, 0)),                 # bx
            pl.BlockSpec((cmid, cin), lambda b, i: (0, 0)),               # Wy
            pl.BlockSpec((cmid, 1), lambda b, i: (0, 0)),                 # by
            pl.BlockSpec((th, hy), lambda b, i: (i, 0)),                  # Mh rows
            pl.BlockSpec((wys, wxs), lambda b, i: (0, 0)),                # Mw^T
        ],
        out_specs=pl.BlockSpec((1, cin, th, wxs), lambda b, i: (b, 0, i, 0)),
        scratch_shapes=[
            pltpu.VMEM((cmid, th, wxs), jnp.float32),   # x_k tile
            pltpu.VMEM((cmid, hy, wys), jnp.float32),   # y_q (low res)
        ],
        compiler_params=pltpu.CompilerParams(
            dimension_semantics=("parallel", "parallel"),
            # Tiles are sized to stay far below this; 32 MiB is safe on
            # v5e/v6e and well within v7x's 64 MiB physical VMEM.
            vmem_limit_bytes=32 * 1024 * 1024,
        ),
    )(x, y, wx_eff, bx_eff, wy_eff, by_eff, mh, mw)
    return out


# Pure-JAX reference (same math, no Pallas) for a correctness check.
def pagfm_reference(x, y, params, *, with_relu=False):
    n, cin, hx, wxs = x.shape
    _, _, hy, wys = y.shape
    xf = x.astype(jnp.float32)
    yf = y.astype(jnp.float32)
    if with_relu:
        xf = jnp.maximum(xf, 0)
        yf = jnp.maximum(yf, 0)
    wx_eff, bx_eff = _fold_conv_bn(params["wx"], params["gx"], params["bx"],
                                   params["mx"], params["vx"])
    wy_eff, by_eff = _fold_conv_bn(params["wy"], params["gy"], params["by"],
                                   params["my"], params["vy"])
    x_k = jnp.einsum("mc,nchw->nmhw", wx_eff, xf) + bx_eff.reshape(1, -1, 1, 1)
    y_q = jnp.einsum("mc,nchw->nmhw", wy_eff, yf) + by_eff.reshape(1, -1, 1, 1)
    mh = jnp.asarray(_interp_matrix(hx, hy))       # (Hx, Hy)
    mw = jnp.asarray(_interp_matrix(wxs, wys))     # (Wx, Wy)
    up = lambda t: jnp.einsum("ah,bw,nchw->ncab", mh, mw, t)
    y_q_up = up(y_q)
    y_up = up(yf)
    sim = jax.nn.sigmoid(jnp.sum(x_k * y_q_up, axis=1, keepdims=True))
    out = (1.0 - sim) * xf + sim * y_up
    return out.astype(x.dtype)


if __name__ == "__main__":
    key = jax.random.PRNGKey(0)
    k = jax.random.split(key, 12)

    N, Cin, Cmid = 2, 4, 2
    Hx, Wx, Hy, Wy = 16, 16, 8, 8

    x = jax.random.normal(k[0], (N, Cin, Hx, Wx), jnp.float32)
    y = jax.random.normal(k[1], (N, Cin, Hy, Wy), jnp.float32)

    params = {
        # f_x: Conv1x1 (Cin->Cmid, no bias, torch weight layout) + BN(Cmid)
        "wx": 0.3 * jax.random.normal(k[2], (Cmid, Cin), jnp.float32),
        "gx": 1.0 + 0.1 * jax.random.normal(k[3], (Cmid,), jnp.float32),
        "bx": 0.1 * jax.random.normal(k[4], (Cmid,), jnp.float32),
        "mx": 0.05 * jax.random.normal(k[5], (Cmid,), jnp.float32),
        "vx": 1.0 + 0.1 * jax.nn.softplus(jax.random.normal(k[6], (Cmid,), jnp.float32)),
        # f_y: Conv1x1 (Cin->Cmid, no bias) + BN(Cmid)
        "wy": 0.3 * jax.random.normal(k[7], (Cmid, Cin), jnp.float32),
        "gy": 1.0 + 0.1 * jax.random.normal(k[8], (Cmid,), jnp.float32),
        "by": 0.1 * jax.random.normal(k[9], (Cmid,), jnp.float32),
        "my": 0.05 * jax.random.normal(k[10], (Cmid,), jnp.float32),
        "vy": 1.0 + 0.1 * jax.nn.softplus(jax.random.normal(k[11], (Cmid,), jnp.float32)),
    }

    ref = jax.block_until_ready(pagfm_reference(x, y, params, with_relu=False))

    # Explicit row tile of 8 -> 2x2 grid (exercises the tiled/pipelined path).
    out = jax.block_until_ready(
        pagfm_forward(x, y, params, with_relu=False, row_block=8))
    assert out.shape == (N, Cin, Hx, Wx), out.shape
    np.testing.assert_allclose(np.asarray(out), np.asarray(ref),
                               rtol=1e-5, atol=1e-5)

    print("KERNEL_OK")
</pallas_src>

<mosaic_0001>
module attributes {stable_mosaic.version = 11 : i64} {
  func.func @_pagfm_kernel(%arg0: i32, %arg1: i32, %arg2: memref<1x4x8x16xf32, #tpu.memory_space<vmem>>, %arg3: memref<1x4x8x8xf32, #tpu.memory_space<vmem>>, %arg4: memref<2x4xf32, #tpu.memory_space<vmem>>, %arg5: memref<2x1xf32, #tpu.memory_space<vmem>>, %arg6: memref<2x4xf32, #tpu.memory_space<vmem>>, %arg7: memref<2x1xf32, #tpu.memory_space<vmem>>, %arg8: memref<8x8xf32, #tpu.memory_space<vmem>>, %arg9: memref<8x16xf32, #tpu.memory_space<vmem>>, %arg10: memref<1x4x8x16xf32, #tpu.memory_space<vmem>>, %arg11: memref<2x8x16xf32, #tpu.memory_space<vmem>>, %arg12: memref<2x8x8xf32, #tpu.memory_space<vmem>>) attributes {dimension_semantics = [#tpu.dimension_semantics<parallel>, #tpu.dimension_semantics<parallel>], iteration_bounds = array<i64: 2, 2>, scalar_prefetch = 0 : i64, scratch_operands = 2 : i64, tpu.core_type = #tpu.core_type<tc>, window_params = [{transform_indices = @transform_0, window_bounds = array<i64: 1, 4, 8, 16>}, {transform_indices = @transform_1, window_bounds = array<i64: 1, 4, 8, 8>}, {pipeline_mode = #tpu.pipeline_mode<synchronous>, transform_indices = @transform_2, window_bounds = array<i64: 2, 4>}, {pipeline_mode = #tpu.pipeline_mode<synchronous>, transform_indices = @transform_3, window_bounds = array<i64: 2, 1>}, {pipeline_mode = #tpu.pipeline_mode<synchronous>, transform_indices = @transform_4, window_bounds = array<i64: 2, 4>}, {pipeline_mode = #tpu.pipeline_mode<synchronous>, transform_indices = @transform_5, window_bounds = array<i64: 2, 1>}, {transform_indices = @transform_6, window_bounds = array<i64: 8, 8>}, {pipeline_mode = #tpu.pipeline_mode<synchronous>, transform_indices = @transform_7, window_bounds = array<i64: 8, 16>}, {transform_indices = @transform_8, window_bounds = array<i64: 1, 4, 8, 16>}]} {
    %c0 = arith.constant 0 : index
    %c0_0 = arith.constant 0 : index
    %0 = vector.load %arg4[%c0, %c0_0] : memref<2x4xf32, #tpu.memory_space<vmem>>, vector<2x4xf32>
    %c0_1 = arith.constant 0 : index
    %c0_2 = arith.constant 0 : index
    %1 = vector.load %arg6[%c0_1, %c0_2] : memref<2x4xf32, #tpu.memory_space<vmem>>, vector<2x4xf32>
    %c0_3 = arith.constant 0 : index
    %c0_4 = arith.constant 0 : index
    %2 = vector.load %arg5[%c0_3, %c0_4] : memref<2x1xf32, #tpu.memory_space<vmem>>, vector<2x1xf32>
    %c0_5 = arith.constant 0 : index
    %c0_6 = arith.constant 0 : index
    %3 = vector.load %arg7[%c0_5, %c0_6] : memref<2x1xf32, #tpu.memory_space<vmem>>, vector<2x1xf32>
    %c0_7 = arith.constant 0 : index
    %c0_8 = arith.constant 0 : index
    %4 = vector.load %arg8[%c0_7, %c0_8] : memref<8x8xf32, #tpu.memory_space<vmem>>, vector<8x8xf32>
    %c0_9 = arith.constant 0 : index
    %c0_10 = arith.constant 0 : index
    %5 = vector.load %arg9[%c0_9, %c0_10] : memref<8x16xf32, #tpu.memory_space<vmem>>, vector<8x16xf32>
    %c0_11 = arith.constant 0 : index
    %c0_12 = arith.constant 0 : index
    %c0_13 = arith.constant 0 : index
    %c0_14 = arith.constant 0 : index
    %6 = vector.load %arg2[%c0_11, %c0_12, %c0_13, %c0_14] : memref<1x4x8x16xf32, #tpu.memory_space<vmem>>, vector<1x4x1x16xf32>
    %7 = vector.shape_cast %6 : vector<1x4x1x16xf32> to vector<4x16xf32>
    %cst = arith.constant dense<0.000000e+00> : vector<2x16xf32>
    %8 = tpu.matmul %0, %7, %cst {dimension_numbers = #tpu.dot_dimension_numbers<[1], [0], [0], [1], [0, 0, 1, 1], [], []>} : vector<2x4xf32>, vector<4x16xf32>, vector<2x16xf32> -> vector<2x16xf32>
    %9 = vector.broadcast %2 : vector<2x1xf32> to vector<2x16xf32>
    %10 = arith.addf %8, %9 : vector<2x16xf32>
    %c0_15 = arith.constant 0 : index
    %c0_16 = arith.constant 0 : index
    %c0_17 = arith.constant 0 : index
    %11 = vector.load %arg11[%c0_15, %c0_16, %c0_17] : memref<2x8x16xf32, #tpu.memory_space<vmem>>, vector<2x1x16xf32>
    %12 = vector.shape_cast %11 : vector<2x1x16xf32> to vector<2x16xf32>
    %13 = vector.shape_cast %10 : vector<2x16xf32> to vector<2x1x16xf32>
    tpu.vector_store %arg11[%c0_15, %c0_16, %c0_17], %13 {strides = array<i32>} : memref<2x8x16xf32, #tpu.memory_space<vmem>>, vector<2x1x16xf32>,
    %c0_18 = arith.constant 0 : index
    %c0_19 = arith.constant 0 : index
    %c1 = arith.constant 1 : index
    %c0_20 = arith.constant 0 : index
    %14 = vector.load %arg2[%c0_18, %c0_19, %c1, %c0_20] : memref<1x4x8x16xf32, #tpu.memory_space<vmem>>, vector<1x4x1x16xf32>
    %15 = vector.shape_cast %14 : vector<1x4x1x16xf32> to vector<4x16xf32>
    %cst_21 = arith.constant dense<0.000000e+00> : vector<2x16xf32>
    %16 = tpu.matmul %0, %15, %cst_21 {dimension_numbers = #tpu.dot_dimension_numbers<[1], [0], [0], [1], [0, 0, 1, 1], [], []>} : vector<2x4xf32>, vector<4x16xf32>, vector<2x16xf32> -> vector<2x16xf32>
    %17 = vector.broadcast %2 : vector<2x1xf32> to vector<2x16xf32>
    %18 = arith.addf %16, %17 : vector<2x16xf32>
    %c0_22 = arith.constant 0 : index
    %c1_23 = arith.constant 1 : index
    %c0_24 = arith.constant 0 : index
    %19 = vector.load %arg11[%c0_22, %c1_23, %c0_24] : memref<2x8x16xf32, #tpu.memory_space<vmem>>, vector<2x1x16xf32>
    %20 = vector.shape_cast %19 : vector<2x1x16xf32> to vector<2x16xf32>
    %21 = vector.shape_cast %18 : vector<2x16xf32> to vector<2x1x16xf32>
    tpu.vector_store %arg11[%c0_22, %c1_23, %c0_24], %21 {strides = array<i32>} : memref<2x8x16xf32, #tpu.memory_space<vmem>>, vector<2x1x16xf32>,
    %c0_25 = arith.constant 0 : index
    %c0_26 = arith.constant 0 : index
    %c2 = arith.constant 2 : index
    %c0_27 = arith.constant 0 : index
    %22 = vector.load %arg2[%c0_25, %c0_26, %c2, %c0_27] : memref<1x4x8x16xf32, #tpu.memory_space<vmem>>, vector<1x4x1x16xf32>
    %23 = vector.shape_cast %22 : vector<1x4x1x16xf32> to vector<4x16xf32>
    %cst_28 = arith.constant dense<0.000000e+00> : vector<2x16xf32>
    %24 = tpu.matmul %0, %23, %cst_28 {dimension_numbers = #tpu.dot_dimension_numbers<[1], [0], [0], [1], [0, 0, 1, 1], [], []>} : vector<2x4xf32>, vector<4x16xf32>, vector<2x16xf32> -> vector<2x16xf32>
    %25 = vector.broadcast %2 : vector<2x1xf32> to vector<2x16xf32>
    %26 = arith.addf %24, %25 : vector<2x16xf32>
    %c0_29 = arith.constant 0 : index
    %c2_30 = arith.constant 2 : index
    %c0_31 = arith.constant 0 : index
    %27 = vector.load %arg11[%c0_29, %c2_30, %c0_31] : memref<2x8x16xf32, #tpu.memory_space<vmem>>, vector<2x1x16xf32>
    %28 = vector.shape_cast %27 : vector<2x1x16xf32> to vector<2x16xf32>
    %29 = vector.shape_cast %26 : vector<2x16xf32> to vector<2x1x16xf32>
    tpu.vector_store %arg11[%c0_29, %c2_30, %c0_31], %29 {strides = array<i32>} : memref<2x8x16xf32, #tpu.memory_space<vmem>>, vector<2x1x16xf32>,
    %c0_32 = arith.constant 0 : index
    %c0_33 = arith.constant 0 : index
    %c3 = arith.constant 3 : index
    %c0_34 = arith.constant 0 : index
    %30 = vector.load %arg2[%c0_32, %c0_33, %c3, %c0_34] : memref<1x4x8x16xf32, #tpu.memory_space<vmem>>, vector<1x4x1x16xf32>
    %31 = vector.shape_cast %30 : vector<1x4x1x16xf32> to vector<4x16xf32>
    %cst_35 = arith.constant dense<0.000000e+00> : vector<2x16xf32>
    %32 = tpu.matmul %0, %31, %cst_35 {dimension_numbers = #tpu.dot_dimension_numbers<[1], [0], [0], [1], [0, 0, 1, 1], [], []>} : vector<2x4xf32>, vector<4x16xf32>, vector<2x16xf32> -> vector<2x16xf32>
    %33 = vector.broadcast %2 : vector<2x1xf32> to vector<2x16xf32>
    %34 = arith.addf %32, %33 : vector<2x16xf32>
    %c0_36 = arith.constant 0 : index
    %c3_37 = arith.constant 3 : index
    %c0_38 = arith.constant 0 : index
    %35 = vector.load %arg11[%c0_36, %c3_37, %c0_38] : memref<2x8x16xf32, #tpu.memory_space<vmem>>, vector<2x1x16xf32>
    %36 = vector.shape_cast %35 : vector<2x1x16xf32> to vector<2x16xf32>
    %37 = vector.shape_cast %34 : vector<2x16xf32> to vector<2x1x16xf32>
    tpu.vector_store %arg11[%c0_36, %c3_37, %c0_38], %37 {strides = array<i32>} : memref<2x8x16xf32, #tpu.memory_space<vmem>>, vector<2x1x16xf32>,
    %c0_39 = arith.constant 0 : index
    %c0_40 = arith.constant 0 : index
    %c4 = arith.constant 4 : index
    %c0_41 = arith.constant 0 : index
    %38 = vector.load %arg2[%c0_39, %c0_40, %c4, %c0_41] : memref<1x4x8x16xf32, #tpu.memory_space<vmem>>, vector<1x4x1x16xf32>
    %39 = vector.shape_cast %38 : vector<1x4x1x16xf32> to vector<4x16xf32>
    %cst_42 = arith.constant dense<0.000000e+00> : vector<2x16xf32>
    %40 = tpu.matmul %0, %39, %cst_42 {dimension_numbers = #tpu.dot_dimension_numbers<[1], [0], [0], [1], [0, 0, 1, 1], [], []>} : vector<2x4xf32>, vector<4x16xf32>, vector<2x16xf32> -> vector<2x16xf32>
    %41 = vector.broadcast %2 : vector<2x1xf32> to vector<2x16xf32>
    %42 = arith.addf %40, %41 : vector<2x16xf32>
    %c0_43 = arith.constant 0 : index
    %c4_44 = arith.constant 4 : index
    %c0_45 = arith.constant 0 : index
    %43 = vector.load %arg11[%c0_43, %c4_44, %c0_45] : memref<2x8x16xf32, #tpu.memory_space<vmem>>, vector<2x1x16xf32>
    %44 = vector.shape_cast %43 : vector<2x1x16xf32> to vector<2x16xf32>
    %45 = vector.shape_cast %42 : vector<2x16xf32> to vector<2x1x16xf32>
    tpu.vector_store %arg11[%c0_43, %c4_44, %c0_45], %45 {strides = array<i32>} : memref<2x8x16xf32, #tpu.memory_space<vmem>>, vector<2x1x16xf32>,
    %c0_46 = arith.constant 0 : index
    %c0_47 = arith.constant 0 : index
    %c5 = arith.constant 5 : index
    %c0_48 = arith.constant 0 : index
    %46 = vector.load %arg2[%c0_46, %c0_47, %c5, %c0_48] : memref<1x4x8x16xf32, #tpu.memory_space<vmem>>, vector<1x4x1x16xf32>
    %47 = vector.shape_cast %46 : vector<1x4x1x16xf32> to vector<4x16xf32>
    %cst_49 = arith.constant dense<0.000000e+00> : vector<2x16xf32>
    %48 = tpu.matmul %0, %47, %cst_49 {dimension_numbers = #tpu.dot_dimension_numbers<[1], [0], [0], [1], [0, 0, 1, 1], [], []>} : vector<2x4xf32>, vector<4x16xf32>, vector<2x16xf32> -> vector<2x16xf32>
    %49 = vector.broadcast %2 : vector<2x1xf32> to vector<2x16xf32>
    %50 = arith.addf %48, %49 : vector<2x16xf32>
    %c0_50 = arith.constant 0 : index
    %c5_51 = arith.constant 5 : index
    %c0_52 = arith.constant 0 : index
    %51 = vector.load %arg11[%c0_50, %c5_51, %c0_52] : memref<2x8x16xf32, #tpu.memory_space<vmem>>, vector<2x1x16xf32>
    %52 = vector.shape_cast %51 : vector<2x1x16xf32> to vector<2x16xf32>
    %53 = vector.shape_cast %50 : vector<2x16xf32> to vector<2x1x16xf32>
    tpu.vector_store %arg11[%c0_50, %c5_51, %c0_52], %53 {strides = array<i32>} : memref<2x8x16xf32, #tpu.memory_space<vmem>>, vector<2x1x16xf32>,
    %c0_53 = arith.constant 0 : index
    %c0_54 = arith.constant 0 : index
    %c6 = arith.constant 6 : index
    %c0_55 = arith.constant 0 : index
    %54 = vector.load %arg2[%c0_53, %c0_54, %c6, %c0_55] : memref<1x4x8x16xf32, #tpu.memory_space<vmem>>, vector<1x4x1x16xf32>
    %55 = vector.shape_cast %54 : vector<1x4x1x16xf32> to vector<4x16xf32>
    %cst_56 = arith.constant dense<0.000000e+00> : vector<2x16xf32>
    %56 = tpu.matmul %0, %55, %cst_56 {dimension_numbers = #tpu.dot_dimension_numbers<[1], [0], [0], [1], [0, 0, 1, 1], [], []>} : vector<2x4xf32>, vector<4x16xf32>, vector<2x16xf32> -> vector<2x16xf32>
    %57 = vector.broadcast %2 : vector<2x1xf32> to vector<2x16xf32>
    %58 = arith.addf %56, %57 : vector<2x16xf32>
    %c0_57 = arith.constant 0 : index
    %c6_58 = arith.constant 6 : index
    %c0_59 = arith.constant 0 : index
    %59 = vector.load %arg11[%c0_57, %c6_58, %c0_59] : memref<2x8x16xf32, #tpu.memory_space<vmem>>, vector<2x1x16xf32>
    %60 = vector.shape_cast %59 : vector<2x1x16xf32> to vector<2x16xf32>
    %61 = vector.shape_cast %58 : vector<2x16xf32> to vector<2x1x16xf32>
    tpu.vector_store %arg11[%c0_57, %c6_58, %c0_59], %61 {strides = array<i32>} : memref<2x8x16xf32, #tpu.memory_space<vmem>>, vector<2x1x16xf32>,
    %c0_60 = arith.constant 0 : index
    %c0_61 = arith.constant 0 : index
    %c7 = arith.constant 7 : index
    %c0_62 = arith.constant 0 : index
    %62 = vector.load %arg2[%c0_60, %c0_61, %c7, %c0_62] : memref<1x4x8x16xf32, #tpu.memory_space<vmem>>, vector<1x4x1x16xf32>
    %63 = vector.shape_cast %62 : vector<1x4x1x16xf32> to vector<4x16xf32>
    %cst_63 = arith.constant dense<0.000000e+00> : vector<2x16xf32>
    %64 = tpu.matmul %0, %63, %cst_63 {dimension_numbers = #tpu.dot_dimension_numbers<[1], [0], [0], [1], [0, 0, 1, 1], [], []>} : vector<2x4xf32>, vector<4x16xf32>, vector<2x16xf32> -> vector<2x16xf32>
    %65 = vector.broadcast %2 : vector<2x1xf32> to vector<2x16xf32>
    %66 = arith.addf %64, %65 : vector<2x16xf32>
    %c0_64 = arith.constant 0 : index
    %c7_65 = arith.constant 7 : index
    %c0_66 = arith.constant 0 : index
    %67 = vector.load %arg11[%c0_64, %c7_65, %c0_66] : memref<2x8x16xf32, #tpu.memory_space<vmem>>, vector<2x1x16xf32>
    %68 = vector.shape_cast %67 : vector<2x1x16xf32> to vector<2x16xf32>
    %69 = vector.shape_cast %66 : vector<2x16xf32> to vector<2x1x16xf32>
    tpu.vector_store %arg11[%c0_64, %c7_65, %c0_66], %69 {strides = array<i32>} : memref<2x8x16xf32, #tpu.memory_space<vmem>>, vector<2x1x16xf32>,
    %c0_67 = arith.constant 0 : index
    %c0_68 = arith.constant 0 : index
    %c0_69 = arith.constant 0 : index
    %c0_70 = arith.constant 0 : index
    %70 = vector.load %arg3[%c0_67, %c0_68, %c0_69, %c0_70] : memref<1x4x8x8xf32, #tpu.memory_space<vmem>>, vector<1x4x1x8xf32>
    %71 = vector.shape_cast %70 : vector<1x4x1x8xf32> to vector<4x8xf32>
    %cst_71 = arith.constant dense<0.000000e+00> : vector<2x8xf32>
    %72 = tpu.matmul %1, %71, %cst_71 {dimension_numbers = #tpu.dot_dimension_numbers<[1], [0], [0], [1], [0, 0, 1, 1], [], []>} : vector<2x4xf32>, vector<4x8xf32>, vector<2x8xf32> -> vector<2x8xf32>
    %73 = vector.broadcast %3 : vector<2x1xf32> to vector<2x8xf32>
    %74 = arith.addf %72, %73 : vector<2x8xf32>
    %c0_72 = arith.constant 0 : index
    %c0_73 = arith.constant 0 : index
    %c0_74 = arith.constant 0 : index
    %75 = vector.load %arg12[%c0_72, %c0_73, %c0_74] : memref<2x8x8xf32, #tpu.memory_space<vmem>>, vector<2x1x8xf32>
    %76 = vector.shape_cast %75 : vector<2x1x8xf32> to vector<2x8xf32>
    %77 = vector.shape_cast %74 : vector<2x8xf32> to vector<2x1x8xf32>
    tpu.vector_store %arg12[%c0_72, %c0_73, %c0_74], %77 {strides = array<i32>} : memref<2x8x8xf32, #tpu.memory_space<vmem>>, vector<2x1x8xf32>,
    %c0_75 = arith.constant 0 : index
    %c0_76 = arith.constant 0 : index
    %c1_77 = arith.constant 1 : index
    %c0_78 = arith.constant 0 : index
    %78 = vector.load %arg3[%c0_75, %c0_76, %c1_77, %c0_78] : memref<1x4x8x8xf32, #tpu.memory_space<vmem>>, vector<1x4x1x8xf32>
    %79 = vector.shape_cast %78 : vector<1x4x1x8xf32> to vector<4x8xf32>
    %cst_79 = arith.constant dense<0.000000e+00> : vector<2x8xf32>
    %80 = tpu.matmul %1, %79, %cst_79 {dimension_numbers = #tpu.dot_dimension_numbers<[1], [0], [0], [1], [0, 0, 1, 1], [], []>} : vector<2x4xf32>, vector<4x8xf32>, vector<2x8xf32> -> vector<2x8xf32>
    %81 = vector.broadcast %3 : vector<2x1xf32> to vector<2x8xf32>
    %82 = arith.addf %80, %81 : vector<2x8xf32>
    %c0_80 = arith.constant 0 : index
    %c1_81 = arith.constant 1 : index
    %c0_82 = arith.constant 0 : index
    %83 = vector.load %arg12[%c0_80, %c1_81, %c0_82] : memref<2x8x8xf32, #tpu.memory_space<vmem>>, vector<2x1x8xf32>
    %84 = vector.shape_cast %83 : vector<2x1x8xf32> to vector<2x8xf32>
    %85 = vector.shape_cast %82 : vector<2x8xf32> to vector<2x1x8xf32>
    tpu.vector_store %arg12[%c0_80, %c1_81, %c0_82], %85 {strides = array<i32>} : memref<2x8x8xf32, #tpu.memory_space<vmem>>, vector<2x1x8xf32>,
    %c0_83 = arith.constant 0 : index
    %c0_84 = arith.constant 0 : index
    %c2_85 = arith.constant 2 : index
    %c0_86 = arith.constant 0 : index
    %86 = vector.load %arg3[%c0_83, %c0_84, %c2_85, %c0_86] : memref<1x4x8x8xf32, #tpu.memory_space<vmem>>, vector<1x4x1x8xf32>
    %87 = vector.shape_cast %86 : vector<1x4x1x8xf32> to vector<4x8xf32>
    %cst_87 = arith.constant dense<0.000000e+00> : vector<2x8xf32>
    %88 = tpu.matmul %1, %87, %cst_87 {dimension_numbers = #tpu.dot_dimension_numbers<[1], [0], [0], [1], [0, 0, 1, 1], [], []>} : vector<2x4xf32>, vector<4x8xf32>, vector<2x8xf32> -> vector<2x8xf32>
    %89 = vector.broadcast %3 : vector<2x1xf32> to vector<2x8xf32>
    %90 = arith.addf %88, %89 : vector<2x8xf32>
    %c0_88 = arith.constant 0 : index
    %c2_89 = arith.constant 2 : index
    %c0_90 = arith.constant 0 : index
    %91 = vector.load %arg12[%c0_88, %c2_89, %c0_90] : memref<2x8x8xf32, #tpu.memory_space<vmem>>, vector<2x1x8xf32>
    %92 = vector.shape_cast %91 : vector<2x1x8xf32> to vector<2x8xf32>
    %93 = vector.shape_cast %90 : vector<2x8xf32> to vector<2x1x8xf32>
    tpu.vector_store %arg12[%c0_88, %c2_89, %c0_90], %93 {strides = array<i32>} : memref<2x8x8xf32, #tpu.memory_space<vmem>>, vector<2x1x8xf32>,
    %c0_91 = arith.constant 0 : index
    %c0_92 = arith.constant 0 : index
    %c3_93 = arith.constant 3 : index
    %c0_94 = arith.constant 0 : index
    %94 = vector.load %arg3[%c0_91, %c0_92, %c3_93, %c0_94] : memref<1x4x8x8xf32, #tpu.memory_space<vmem>>, vector<1x4x1x8xf32>
    %95 = vector.shape_cast %94 : vector<1x4x1x8xf32> to vector<4x8xf32>
    %cst_95 = arith.constant dense<0.000000e+00> : vector<2x8xf32>
    %96 = tpu.matmul %1, %95, %cst_95 {dimension_numbers = #tpu.dot_dimension_numbers<[1], [0], [0], [1], [0, 0, 1, 1], [], []>} : vector<2x4xf32>, vector<4x8xf32>, vector<2x8xf32> -> vector<2x8xf32>
    %97 = vector.broadcast %3 : vector<2x1xf32> to vector<2x8xf32>
    %98 = arith.addf %96, %97 : vector<2x8xf32>
    %c0_96 = arith.constant 0 : index
    %c3_97 = arith.constant 3 : index
    %c0_98 = arith.constant 0 : index
    %99 = vector.load %arg12[%c0_96, %c3_97, %c0_98] : memref<2x8x8xf32, #tpu.memory_space<vmem>>, vector<2x1x8xf32>
    %100 = vector.shape_cast %99 : vector<2x1x8xf32> to vector<2x8xf32>
    %101 = vector.shape_cast %98 : vector<2x8xf32> to vector<2x1x8xf32>
    tpu.vector_store %arg12[%c0_96, %c3_97, %c0_98], %101 {strides = array<i32>} : memref<2x8x8xf32, #tpu.memory_space<vmem>>, vector<2x1x8xf32>,
    %c0_99 = arith.constant 0 : index
    %c0_100 = arith.constant 0 : index
    %c4_101 = arith.constant 4 : index
    %c0_102 = arith.constant 0 : index
    %102 = vector.load %arg3[%c0_99, %c0_100, %c4_101, %c0_102] : memref<1x4x8x8xf32, #tpu.memory_space<vmem>>, vector<1x4x1x8xf32>
    %103 = vector.shape_cast %102 : vector<1x4x1x8xf32> to vector<4x8xf32>
    %cst_103 = arith.constant dense<0.000000e+00> : vector<2x8xf32>
    %104 = tpu.matmul %1, %103, %cst_103 {dimension_numbers = #tpu.dot_dimension_numbers<[1], [0], [0], [1], [0, 0, 1, 1], [], []>} : vector<2x4xf32>, vector<4x8xf32>, vector<2x8xf32> -> vector<2x8xf32>
    %105 = vector.broadcast %3 : vector<2x1xf32> to vector<2x8xf32>
    %106 = arith.addf %104, %105 : vector<2x8xf32>
    %c0_104 = arith.constant 0 : index
    %c4_105 = arith.constant 4 : index
    %c0_106 = arith.constant 0 : index
    %107 = vector.load %arg12[%c0_104, %c4_105, %c0_106] : memref<2x8x8xf32, #tpu.memory_space<vmem>>, vector<2x1x8xf32>
    %108 = vector.shape_cast %107 : vector<2x1x8xf32> to vector<2x8xf32>
    %109 = vector.shape_cast %106 : vector<2x8xf32> to vector<2x1x8xf32>
    tpu.vector_store %arg12[%c0_104, %c4_105, %c0_106], %109 {strides = array<i32>} : memref<2x8x8xf32, #tpu.memory_space<vmem>>, vector<2x1x8xf32>,
    %c0_107 = arith.constant 0 : index
    %c0_108 = arith.constant 0 : index
    %c5_109 = arith.constant 5 : index
    %c0_110 = arith.constant 0 : index
    %110 = vector.load %arg3[%c0_107, %c0_108, %c5_109, %c0_110] : memref<1x4x8x8xf32, #tpu.memory_space<vmem>>, vector<1x4x1x8xf32>
    %111 = vector.shape_cast %110 : vector<1x4x1x8xf32> to vector<4x8xf32>
    %cst_111 = arith.constant dense<0.000000e+00> : vector<2x8xf32>
    %112 = tpu.matmul %1, %111, %cst_111 {dimension_numbers = #tpu.dot_dimension_numbers<[1], [0], [0], [1], [0, 0, 1, 1], [], []>} : vector<2x4xf32>, vector<4x8xf32>, vector<2x8xf32> -> vector<2x8xf32>
    %113 = vector.broadcast %3 : vector<2x1xf32> to vector<2x8xf32>
    %114 = arith.addf %112, %113 : vector<2x8xf32>
    %c0_112 = arith.constant 0 : index
    %c5_113 = arith.constant 5 : index
    %c0_114 = arith.constant 0 : index
    %115 = vector.load %arg12[%c0_112, %c5_113, %c0_114] : memref<2x8x8xf32, #tpu.memory_space<vmem>>, vector<2x1x8xf32>
    %116 = vector.shape_cast %115 : vector<2x1x8xf32> to vector<2x8xf32>
    %117 = vector.shape_cast %114 : vector<2x8xf32> to vector<2x1x8xf32>
    tpu.vector_store %arg12[%c0_112, %c5_113, %c0_114], %117 {strides = array<i32>} : memref<2x8x8xf32, #tpu.memory_space<vmem>>, vector<2x1x8xf32>,
    %c0_115 = arith.constant 0 : index
    %c0_116 = arith.constant 0 : index
    %c6_117 = arith.constant 6 : index
    %c0_118 = arith.constant 0 : index
    %118 = vector.load %arg3[%c0_115, %c0_116, %c6_117, %c0_118] : memref<1x4x8x8xf32, #tpu.memory_space<vmem>>, vector<1x4x1x8xf32>
    %119 = vector.shape_cast %118 : vector<1x4x1x8xf32> to vector<4x8xf32>
    %cst_119 = arith.constant dense<0.000000e+00> : vector<2x8xf32>
    %120 = tpu.matmul %1, %119, %cst_119 {dimension_numbers = #tpu.dot_dimension_numbers<[1], [0], [0], [1], [0, 0, 1, 1], [], []>} : vector<2x4xf32>, vector<4x8xf32>, vector<2x8xf32> -> vector<2x8xf32>
    %121 = vector.broadcast %3 : vector<2x1xf32> to vector<2x8xf32>
    %122 = arith.addf %120, %121 : vector<2x8xf32>
    %c0_120 = arith.constant 0 : index
    %c6_121 = arith.constant 6 : index
    %c0_122 = arith.constant 0 : index
    %123 = vector.load %arg12[%c0_120, %c6_121, %c0_122] : memref<2x8x8xf32, #tpu.memory_space<vmem>>, vector<2x1x8xf32>
    %124 = vector.shape_cast %123 : vector<2x1x8xf32> to vector<2x8xf32>
    %125 = vector.shape_cast %122 : vector<2x8xf32> to vector<2x1x8xf32>
    tpu.vector_store %arg12[%c0_120, %c6_121, %c0_122], %125 {strides = array<i32>} : memref<2x8x8xf32, #tpu.memory_space<vmem>>, vector<2x1x8xf32>,
    %c0_123 = arith.constant 0 : index
    %c0_124 = arith.constant 0 : index
    %c7_125 = arith.constant 7 : index
    %c0_126 = arith.constant 0 : index
    %126 = vector.load %arg3[%c0_123, %c0_124, %c7_125, %c0_126] : memref<1x4x8x8xf32, #tpu.memory_space<vmem>>, vector<1x4x1x8xf32>
    %127 = vector.shape_cast %126 : vector<1x4x1x8xf32> to vector<4x8xf32>
    %cst_127 = arith.constant dense<0.000000e+00> : vector<2x8xf32>
    %128 = tpu.matmul %1, %127, %cst_127 {dimension_numbers = #tpu.dot_dimension_numbers<[1], [0], [0], [1], [0, 0, 1, 1], [], []>} : vector<2x4xf32>, vector<4x8xf32>, vector<2x8xf32> -> vector<2x8xf32>
    %129 = vector.broadcast %3 : vector<2x1xf32> to vector<2x8xf32>
    %130 = arith.addf %128, %129 : vector<2x8xf32>
    %c0_128 = arith.constant 0 : index
    %c7_129 = arith.constant 7 : index
    %c0_130 = arith.constant 0 : index
    %131 = vector.load %arg12[%c0_128, %c7_129, %c0_130] : memref<2x8x8xf32, #tpu.memory_space<vmem>>, vector<2x1x8xf32>
    %132 = vector.shape_cast %131 : vector<2x1x8xf32> to vector<2x8xf32>
    %133 = vector.shape_cast %130 : vector<2x8xf32> to vector<2x1x8xf32>
    tpu.vector_store %arg12[%c0_128, %c7_129, %c0_130], %133 {strides = array<i32>} : memref<2x8x8xf32, #tpu.memory_space<vmem>>, vector<2x1x8xf32>,
    %c0_131 = arith.constant 0 : index
    %c0_132 = arith.constant 0 : index
    %c0_133 = arith.constant 0 : index
    %134 = vector.load %arg11[%c0_131, %c0_132, %c0_133] : memref<2x8x16xf32, #tpu.memory_space<vmem>>, vector<1x8x16xf32>
    %135 = vector.shape_cast %134 : vector<1x8x16xf32> to vector<8x16xf32>
    %c0_134 = arith.constant 0 : index
    %c0_135 = arith.constant 0 : index
    %c0_136 = arith.constant 0 : index
    %136 = vector.load %arg12[%c0_134, %c0_135, %c0_136] : memref<2x8x8xf32, #tpu.memory_space<vmem>>, vector<1x8x8xf32>
    %137 = vector.shape_cast %136 : vector<1x8x8xf32> to vector<8x8xf32>
    %cst_137 = arith.constant dense<0.000000e+00> : vector<8x8xf32>
    %138 = tpu.matmul %4, %137, %cst_137 {dimension_numbers = #tpu.dot_dimension_numbers<[1], [0], [0], [1], [0, 0, 1, 1], [], []>} : vector<8x8xf32>, vector<8x8xf32>, vector<8x8xf32> -> vector<8x8xf32>
    %cst_138 = arith.constant dense<0.000000e+00> : vector<8x16xf32>
    %139 = tpu.matmul %138, %5, %cst_138 {dimension_numbers = #tpu.dot_dimension_numbers<[1], [0], [0], [1], [0, 0, 1, 1], [], []>} : vector<8x8xf32>, vector<8x16xf32>, vector<8x16xf32> -> vector<8x16xf32>
    %140 = arith.mulf %135, %139 : vector<8x16xf32>
    %c1_139 = arith.constant 1 : index
    %c0_140 = arith.constant 0 : index
    %c0_141 = arith.constant 0 : index
    %141 = vector.load %arg11[%c1_139, %c0_140, %c0_141] : memref<2x8x16xf32, #tpu.memory_space<vmem>>, vector<1x8x16xf32>
    %142 = vector.shape_cast %141 : vector<1x8x16xf32> to vector<8x16xf32>
    %c1_142 = arith.constant 1 : index
    %c0_143 = arith.constant 0 : index
    %c0_144 = arith.constant 0 : index
    %143 = vector.load %arg12[%c1_142, %c0_143, %c0_144] : memref<2x8x8xf32, #tpu.memory_space<vmem>>, vector<1x8x8xf32>
    %144 = vector.shape_cast %143 : vector<1x8x8xf32> to vector<8x8xf32>
    %cst_145 = arith.constant dense<0.000000e+00> : vector<8x8xf32>
    %145 = tpu.matmul %4, %144, %cst_145 {dimension_numbers = #tpu.dot_dimension_numbers<[1], [0], [0], [1], [0, 0, 1, 1], [], []>} : vector<8x8xf32>, vector<8x8xf32>, vector<8x8xf32> -> vector<8x8xf32>
    %cst_146 = arith.constant dense<0.000000e+00> : vector<8x16xf32>
    %146 = tpu.matmul %145, %5, %cst_146 {dimension_numbers = #tpu.dot_dimension_numbers<[1], [0], [0], [1], [0, 0, 1, 1], [], []>} : vector<8x8xf32>, vector<8x16xf32>, vector<8x16xf32> -> vector<8x16xf32>
    %147 = arith.mulf %142, %146 : vector<8x16xf32>
    %148 = arith.addf %140, %147 : vector<8x16xf32>
    %149 = arith.negf %148 : vector<8x16xf32>
    %150 = math.exp %149 : vector<8x16xf32>
    %cst_147 = arith.constant 1.000000e+00 : f32
    %151 = vector.broadcast %cst_147 : f32 to vector<8x16xf32>
    %152 = arith.addf %151, %150 : vector<8x16xf32>
    %153 = arith.divf %151, %152 : vector<8x16xf32>
    %c0_148 = arith.constant 0 : index
    %c0_149 = arith.constant 0 : index
    %c0_150 = arith.constant 0 : index
    %c0_151 = arith.constant 0 : index
    %154 = vector.load %arg2[%c0_148, %c0_149, %c0_150, %c0_151] : memref<1x4x8x16xf32, #tpu.memory_space<vmem>>, vector<1x1x8x16xf32>
    %155 = vector.shape_cast %154 : vector<1x1x8x16xf32> to vector<8x16xf32>
    %c0_152 = arith.constant 0 : index
    %c0_153 = arith.constant 0 : index
    %c0_154 = arith.constant 0 : index
    %c0_155 = arith.constant 0 : index
    %156 = vector.load %arg3[%c0_152, %c0_153, %c0_154, %c0_155] : memref<1x4x8x8xf32, #tpu.memory_space<vmem>>, vector<1x1x8x8xf32>
    %157 = vector.shape_cast %156 : vector<1x1x8x8xf32> to vector<8x8xf32>
    %cst_156 = arith.constant dense<0.000000e+00> : vector<8x8xf32>
    %158 = tpu.matmul %4, %157, %cst_156 {dimension_numbers = #tpu.dot_dimension_numbers<[1], [0], [0], [1], [0, 0, 1, 1], [], []>} : vector<8x8xf32>, vector<8x8xf32>, vector<8x8xf32> -> vector<8x8xf32>
    %cst_157 = arith.constant dense<0.000000e+00> : vector<8x16xf32>
    %159 = tpu.matmul %158, %5, %cst_157 {dimension_numbers = #tpu.dot_dimension_numbers<[1], [0], [0], [1], [0, 0, 1, 1], [], []>} : vector<8x8xf32>, vector<8x16xf32>, vector<8x16xf32> -> vector<8x16xf32>
    %160 = arith.subf %159, %155 : vector<8x16xf32>
    %161 = arith.mulf %153, %160 : vector<8x16xf32>
    %162 = arith.addf %155, %161 : vector<8x16xf32>
    %c0_158 = arith.constant 0 : index
    %c0_159 = arith.constant 0 : index
    %c0_160 = arith.constant 0 : index
    %c0_161 = arith.constant 0 : index
    %163 = vector.load %arg10[%c0_158, %c0_159, %c0_160, %c0_161] : memref<1x4x8x16xf32, #tpu.memory_space<vmem>>, vector<1x1x8x16xf32>
    %164 = vector.shape_cast %163 : vector<1x1x8x16xf32> to vector<8x16xf32>
    %165 = vector.shape_cast %162 : vector<8x16xf32> to vector<1x1x8x16xf32>
    tpu.vector_store %arg10[%c0_158, %c0_159, %c0_160, %c0_161], %165 {strides = array<i32>} : memref<1x4x8x16xf32, #tpu.memory_space<vmem>>, vector<1x1x8x16xf32>,
    %c0_162 = arith.constant 0 : index
    %c1_163 = arith.constant 1 : index
    %c0_164 = arith.constant 0 : index
    %c0_165 = arith.constant 0 : index
    %166 = vector.load %arg2[%c0_162, %c1_163, %c0_164, %c0_165] : memref<1x4x8x16xf32, #tpu.memory_space<vmem>>, vector<1x1x8x16xf32>
    %167 = vector.shape_cast %166 : vector<1x1x8x16xf32> to vector<8x16xf32>
    %c0_166 = arith.constant 0 : index
    %c1_167 = arith.constant 1 : index
    %c0_168 = arith.constant 0 : index
    %c0_169 = arith.constant 0 : index
    %168 = vector.load %arg3[%c0_166, %c1_167, %c0_168, %c0_169] : memref<1x4x8x8xf32, #tpu.memory_space<vmem>>, vector<1x1x8x8xf32>
    %169 = vector.shape_cast %168 : vector<1x1x8x8xf32> to vector<8x8xf32>
    %cst_170 = arith.constant dense<0.000000e+00> : vector<8x8xf32>
    %170 = tpu.matmul %4, %169, %cst_170 {dimension_numbers = #tpu.dot_dimension_numbers<[1], [0], [0], [1], [0, 0, 1, 1], [], []>} : vector<8x8xf32>, vector<8x8xf32>, vector<8x8xf32> -> vector<8x8xf32>
    %cst_171 = arith.constant dense<0.000000e+00> : vector<8x16xf32>
    %171 = tpu.matmul %170, %5, %cst_171 {dimension_numbers = #tpu.dot_dimension_numbers<[1], [0], [0], [1], [0, 0, 1, 1], [], []>} : vector<8x8xf32>, vector<8x16xf32>, vector<8x16xf32> -> vector<8x16xf32>
    %172 = arith.subf %171, %167 : vector<8x16xf32>
    %173 = arith.mulf %153, %172 : vector<8x16xf32>
    %174 = arith.addf %167, %173 : vector<8x16xf32>
    %c0_172 = arith.constant 0 : index
    %c1_173 = arith.constant 1 : index
    %c0_174 = arith.constant 0 : index
    %c0_175 = arith.constant 0 : index
    %175 = vector.load %arg10[%c0_172, %c1_173, %c0_174, %c0_175] : memref<1x4x8x16xf32, #tpu.memory_space<vmem>>, vector<1x1x8x16xf32>
    %176 = vector.shape_cast %175 : vector<1x1x8x16xf32> to vector<8x16xf32>
    %177 = vector.shape_cast %174 : vector<8x16xf32> to vector<1x1x8x16xf32>
    tpu.vector_store %arg10[%c0_172, %c1_173, %c0_174, %c0_175], %177 {strides = array<i32>} : memref<1x4x8x16xf32, #tpu.memory_space<vmem>>, vector<1x1x8x16xf32>,
    %c0_176 = arith.constant 0 : index
    %c2_177 = arith.constant 2 : index
    %c0_178 = arith.constant 0 : index
    %c0_179 = arith.constant 0 : index
    %178 = vector.load %arg2[%c0_176, %c2_177, %c0_178, %c0_179] : memref<1x4x8x16xf32, #tpu.memory_space<vmem>>, vector<1x1x8x16xf32>
    %179 = vector.shape_cast %178 : vector<1x1x8x16xf32> to vector<8x16xf32>
    %c0_180 = arith.constant 0 : index
    %c2_181 = arith.constant 2 : index
    %c0_182 = arith.constant 0 : index
    %c0_183 = arith.constant 0 : index
    %180 = vector.load %arg3[%c0_180, %c2_181, %c0_182, %c0_183] : memref<1x4x8x8xf32, #tpu.memory_space<vmem>>, vector<1x1x8x8xf32>
    %181 = vector.shape_cast %180 : vector<1x1x8x8xf32> to vector<8x8xf32>
    %cst_184 = arith.constant dense<0.000000e+00> : vector<8x8xf32>
    %182 = tpu.matmul %4, %181, %cst_184 {dimension_numbers = #tpu.dot_dimension_numbers<[1], [0], [0], [1], [0, 0, 1, 1], [], []>} : vector<8x8xf32>, vector<8x8xf32>, vector<8x8xf32> -> vector<8x8xf32>
    %cst_185 = arith.constant dense<0.000000e+00> : vector<8x16xf32>
    %183 = tpu.matmul %182, %5, %cst_185 {dimension_numbers = #tpu.dot_dimension_numbers<[1], [0], [0], [1], [0, 0, 1, 1], [], []>} : vector<8x8xf32>, vector<8x16xf32>, vector<8x16xf32> -> vector<8x16xf32>
    %184 = arith.subf %183, %179 : vector<8x16xf32>
    %185 = arith.mulf %153, %184 : vector<8x16xf32>
    %186 = arith.addf %179, %185 : vector<8x16xf32>
    %c0_186 = arith.constant 0 : index
    %c2_187 = arith.constant 2 : index
    %c0_188 = arith.constant 0 : index
    %c0_189 = arith.constant 0 : index
    %187 = vector.load %arg10[%c0_186, %c2_187, %c0_188, %c0_189] : memref<1x4x8x16xf32, #tpu.memory_space<vmem>>, vector<1x1x8x16xf32>
    %188 = vector.shape_cast %187 : vector<1x1x8x16xf32> to vector<8x16xf32>
    %189 = vector.shape_cast %186 : vector<8x16xf32> to vector<1x1x8x16xf32>
    tpu.vector_store %arg10[%c0_186, %c2_187, %c0_188, %c0_189], %189 {strides = array<i32>} : memref<1x4x8x16xf32, #tpu.memory_space<vmem>>, vector<1x1x8x16xf32>,
    %c0_190 = arith.constant 0 : index
    %c3_191 = arith.constant 3 : index
    %c0_192 = arith.constant 0 : index
    %c0_193 = arith.constant 0 : index
    %190 = vector.load %arg2[%c0_190, %c3_191, %c0_192, %c0_193] : memref<1x4x8x16xf32, #tpu.memory_space<vmem>>, vector<1x1x8x16xf32>
    %191 = vector.shape_cast %190 : vector<1x1x8x16xf32> to vector<8x16xf32>
    %c0_194 = arith.constant 0 : index
    %c3_195 = arith.constant 3 : index
    %c0_196 = arith.constant 0 : index
    %c0_197 = arith.constant 0 : index
    %192 = vector.load %arg3[%c0_194, %c3_195, %c0_196, %c0_197] : memref<1x4x8x8xf32, #tpu.memory_space<vmem>>, vector<1x1x8x8xf32>
    %193 = vector.shape_cast %192 : vector<1x1x8x8xf32> to vector<8x8xf32>
    %cst_198 = arith.constant dense<0.000000e+00> : vector<8x8xf32>
    %194 = tpu.matmul %4, %193, %cst_198 {dimension_numbers = #tpu.dot_dimension_numbers<[1], [0], [0], [1], [0, 0, 1, 1], [], []>} : vector<8x8xf32>, vector<8x8xf32>, vector<8x8xf32> -> vector<8x8xf32>
    %cst_199 = arith.constant dense<0.000000e+00> : vector<8x16xf32>
    %195 = tpu.matmul %194, %5, %cst_199 {dimension_numbers = #tpu.dot_dimension_numbers<[1], [0], [0], [1], [0, 0, 1, 1], [], []>} : vector<8x8xf32>, vector<8x16xf32>, vector<8x16xf32> -> vector<8x16xf32>
    %196 = arith.subf %195, %191 : vector<8x16xf32>
    %197 = arith.mulf %153, %196 : vector<8x16xf32>
    %198 = arith.addf %191, %197 : vector<8x16xf32>
    %c0_200 = arith.constant 0 : index
    %c3_201 = arith.constant 3 : index
    %c0_202 = arith.constant 0 : index
    %c0_203 = arith.constant 0 : index
    %199 = vector.load %arg10[%c0_200, %c3_201, %c0_202, %c0_203] : memref<1x4x8x16xf32, #tpu.memory_space<vmem>>, vector<1x1x8x16xf32>
    %200 = vector.shape_cast %199 : vector<1x1x8x16xf32> to vector<8x16xf32>
    %201 = vector.shape_cast %198 : vector<8x16xf32> to vector<1x1x8x16xf32>
    tpu.vector_store %arg10[%c0_200, %c3_201, %c0_202, %c0_203], %201 {strides = array<i32>} : memref<1x4x8x16xf32, #tpu.memory_space<vmem>>, vector<1x1x8x16xf32>,
    return
  }
  func.func @transform_0(%arg0: i32, %arg1: i32) -> (i32, i32, i32, i32) {
    %c0_i32 = arith.constant 0 : i32
    %c0_i32_0 = arith.constant 0 : i32
    %c0_i32_1 = arith.constant 0 : i32
    return %arg0, %c0_i32, %arg1, %c0_i32_0 : i32, i32, i32, i32
  }
  func.func @transform_1(%arg0: i32, %arg1: i32) -> (i32, i32, i32, i32) {
    %c0_i32 = arith.constant 0 : i32
    %c0_i32_0 = arith.constant 0 : i32
    %c0_i32_1 = arith.constant 0 : i32
    %c0_i32_2 = arith.constant 0 : i32
    return %arg0, %c0_i32, %c0_i32_0, %c0_i32_1 : i32, i32, i32, i32
  }
  func.func @transform_2(%arg0: i32, %arg1: i32) -> (i32, i32) {
    %c0_i32 = arith.constant 0 : i32
    %c0_i32_0 = arith.constant 0 : i32
    %c0_i32_1 = arith.constant 0 : i32
    return %c0_i32, %c0_i32_0 : i32, i32
  }
  func.func @transform_3(%arg0: i32, %arg1: i32) -> (i32, i32) {
    %c0_i32 = arith.constant 0 : i32
    %c0_i32_0 = arith.constant 0 : i32
    %c0_i32_1 = arith.constant 0 : i32
    return %c0_i32, %c0_i32_0 : i32, i32
  }
  func.func @transform_4(%arg0: i32, %arg1: i32) -> (i32, i32) {
    %c0_i32 = arith.constant 0 : i32
    %c0_i32_0 = arith.constant 0 : i32
    %c0_i32_1 = arith.constant 0 : i32
    return %c0_i32, %c0_i32_0 : i32, i32
  }
  func.func @transform_5(%arg0: i32, %arg1: i32) -> (i32, i32) {
    %c0_i32 = arith.constant 0 : i32
    %c0_i32_0 = arith.constant 0 : i32
    %c0_i32_1 = arith.constant 0 : i32
    return %c0_i32, %c0_i32_0 : i32, i32
  }
  func.func @transform_6(%arg0: i32, %arg1: i32) -> (i32, i32) {
    %c0_i32 = arith.constant 0 : i32
    %c0_i32_0 = arith.constant 0 : i32
    return %arg1, %c0_i32 : i32, i32
  }
  func.func @transform_7(%arg0: i32, %arg1: i32) -> (i32, i32) {
    %c0_i32 = arith.constant 0 : i32
    %c0_i32_0 = arith.constant 0 : i32
    %c0_i32_1 = arith.constant 0 : i32
    return %c0_i32, %c0_i32_0 : i32, i32
  }
  func.func @transform_8(%arg0: i32, %arg1: i32) -> (i32, i32, i32, i32) {
    %c0_i32 = arith.constant 0 : i32
    %c0_i32_0 = arith.constant 0 : i32
    %c0_i32_1 = arith.constant 0 : i32
    return %arg0, %c0_i32, %arg1, %c0_i32_0 : i32, i32, i32, i32
  }
}

</mosaic_0001>

<bundles_post_ra>
// kernel: tpu_custom_call.1
= control target key start
LH: loop header
LB: loop body
LE: loop exit
PB: predicated region body
PF: predicated region fallthrough
CT: control target
= control target key end

     0   :  { %s4564_s0 = inlined_call_operand.hbm [shape: f32[2,4,16,16], index: 0, kind: input, shape index: {}]   ;;  %s4565_s1 = inlined_call_operand.hbm [shape: f32[2,4,8,8], index: 1, kind: input, shape index: {}]   ;;  %s4566_s2 = inlined_call_operand.vmem [shape: f32[2,4], index: 2, kind: input, shape index: {}]   ;;  %s4567_s3 = inlined_call_operand.vmem [shape: f32[2,1], index: 3, kind: input, shape index: {}]   ;;  %s4568_s4 = inlined_call_operand.vmem [shape: f32[2,4], index: 4, kind: input, shape index: {}]   ;;  %s4569_s5 = inlined_call_operand.vmem [shape: f32[2,1], index: 5, kind: input, shape index: {}]   ;;  %s4570_s6 = inlined_call_operand.vmem [shape: f32[16,8], index: 6, kind: input, shape index: {}]   ;;  %s4571_s7 = inlined_call_operand.vmem [shape: f32[8,16], index: 7, kind: input, shape index: {}]   ;;  %s4572_s8 = inlined_call_operand.hbm [shape: f32[2,4,16,16], index: 8, kind: output, shape index: {}]  }
   0x1   :  { %4586 = sst [smem:[#allocation19_spill]] %s4564_s0 }
   0x2   :  { %4587 = sst [smem:[#allocation20_spill]] %s4570_s6 }
   0x3   :  { %4588 = sst [smem:[#allocation21_spill]] %s4571_s7 }
   0x4   :  { %4589 = sst [smem:[#allocation22_spill]] %s4572_s8 }
   0x5   :  { %13 = vsyncpa [#allocation5], 0 }
   0x6   :  { %15 = vsyncpa [#allocation5 + $0x1], 0 }
   0x7   :  { %16 = vsyncpa [#allocation8], 0 }
   0x8   :  { %18 = vsyncpa [#allocation8 + $0x1], 0 }
   0x9   :  { %19 = vsyncpa [#allocation6], 0 }
   0xa   :  { %21 = vsyncpa [#allocation6 + $0x1], 0  ;;  %s3917_s27 = smov 0   ;;  %s3919_s28 = smov 0  }
   0xb   :  { %s3921_s29 = smov 0   ;;  %s3923_s30 = smov 0  }
   0xc   :  { %s3925_s9 = smov 0   ;;  %s3927_s10 = smov 0  }
   0xd   :  { %s3929_s11 = smov 0   ;;  %s3931_s12 = smov 0  }
   0xe   :  { %s3933_s13 = smov 0   ;;  %s3935_s14 = smov 0  }
   0xf   :  { %s3937_s15 = smov 0  }
  0x10 LB: > { %4590 = sst [smem:[#allocation13_spill]] %s3841_s11  ;;  %s4573_s16 = sadd.s32 4294967295, %s3857_s15   ;;  %s3857_s15 = sphi %s3937_s15, %s27_s15   ;;  %s3853_s14 = sphi %s3935_s14, %s4630_s14   ;;  %s3849_s13 = sphi %s3933_s13, %s4629_s13   ;;  %s3845_s12 = sphi %s3931_s12, %s4628_s12   ;;  %s3841_s11 = sphi %s3929_s11, %s4627_s11   ;;  %s3837_s10 = sphi %s3927_s10, %s4626_s10   ;;  %s3833_s9 = sphi %s3925_s9, %s4625_s9   ;;  %s3829_s30 = sphi %s3923_s30, %s4624_s30   ;;  %s3825_s29 = sphi %s3921_s29, %s4623_s29   ;;  %s3821_s28 = sphi %s3919_s28, %s4622_s28   ;;  %s3817_s27 = sphi %s3917_s27, %s4621_s27  }
  0x11   : > { %4591 = sst [smem:[#allocation14_spill]] %s3845_s12  ;;  %s3285_s17 = sadd.s32 4294967294, %s3857_s15  }
  0x12   : > { %s36_s18 = sadd.s32 1, %s3849_s13  ;;  %s39_s19 = sadd.s32 1, %s3853_s14 }
  0x13   : > { %p37_p0 = scmp.ge.s32.totalorder %s36_s18, 2  ;;  %s48_s20 = sadd.s32 1, %s3837_s10 }
  0x14   : > { %p55_p1 = scmp.ne.s32.totalorder %s3837_s10, %s3833_s9  ;;  %p4581_p2 = scmp.eq.s32.totalorder %s3857_s15, 0 }
  0x15   : > { %s4632_s18 = smov (%p37_p0, %s36_s18), 0  ;;  %s4634_s19 = smov (!%p37_p0, %s39_s19), %s3853_s14 }
  0x16   : > { %4592 = sst [smem:[#allocation15_spill]] %s4632_s18  ;;  %s44_s21 = ssub.s32 %s3849_s13, %s4632_s18 }
  0x17   : > { %p3987_p3 = por %p4581_p2, %p55_p1  ;;  %p41_p4 = scmp.ge.s32.totalorder %s4634_s19, 2 }
  0x18   : > { %p4582_p5 = scmp.ne.s32.totalorder %s3833_s9, %s3829_s30  ;;  %p244_p6 = scmp.eq.s32.totalorder %s4573_s16, 3 }
  0x19   : > { %p250_p7 = scmp.eq.s32.totalorder %s3285_s17, 3  ;;  %s4636_s19 = smov (%p41_p4, %s4634_s19), 0 }
  0x1a   : > { %4594 = sst [smem:[#allocation16_spill]] %s4636_s19  ;;  %p3997_p8 = por %p244_p6, %p55_p1 }
  0x1b   : > { %p4004_p9 = por %p250_p7, %p4582_p5  ;;  %s4010_s25 = ssub.s32 %s3853_s14, %s4636_s19 }
  0x1c   : > { %s4595_s23 = scalar_select %p3997_p8, 1, 0 }
  0x1d   : > { %s4597_s24 = scalar_select %p4004_p9, 1, 0 }
  0x1e   : > { %4596 = sst [smem:[#allocation17_spill]] %s4595_s23  ;;  %s45_s26 = sor.u32 %s44_s21, %s4010_s25 }
  0x1f   : > { %4598 = sst [smem:[#allocation18_spill]] %s4597_s24  ;;  %p72_p10 = scmp.eq.s32.totalorder %s4010_s25, 0 }
  0x20   : > { %p46_p11 = scmp.eq.s32.totalorder %s45_s26, 0  ;;  %p3572_p12 = scmp.lt.s32.totalorder %s3857_s15, 4 }
  0x21   : > { %s285_s17 = sand.u32 1, %s3837_s10   ;;  %s3289_s16 = sshll.u32 %s3853_s14, 3 }
  0x22   : > { %s4018_s18 = scalar_select %p46_p11, %s3837_s10, %s48_s20  }
  0x23   : > { %s3288_s8 = sshll.u32 %s285_s17, 5  ;;  %s294_s23 = sadd.s32 %s3849_s13, %s3289_s16 }
  0x24   : > { %s3290_s12 = sshll.u32 %s294_s23, 7  ;;  %s289_s7 = scalar_lea.vmem [#allocation4], %s3288_s8 }
  0x25   : > { %s297_s24 = sshll.u32 %s289_s7, 4  ;;  %s4599_s0 = sld [smem:[#allocation19_spill]]  ;;  %s298_s24 = int_to_ptr.vmem [resolvable:$true] %s297_s24 }
  0x26   : > { %p4028_p13 = pnand %p3572_p12, %p3987_p3  ;;  %p3294_p0 = scmp.ge.s32.totalorder %s3857_s15, 1 }
  0x27   : > { %s286_s20 = scalar_lea.sflag [#allocation5], %s285_s17  ;;  %s3690_s16 = scalar_lea.vmem %s298_s24, 512 }
  0x28   : > { %p3679_p1 = pneg %p4028_p13  ;;  %p3691_p4 = scmp.ne.s32.totalorder %s298_s24, %s3690_s16 }
  0x29   : > { %s3859_s7 = smov [#allocation4]  }
  0x2a   : > { %p3693_p6 = pnand %p3691_p4, %p3679_p1  ;;  %s3695_s8 = sshll.u32 %s3859_s7, 4  ;;  %s3696_s8 = int_to_ptr.vmem [resolvable:$false] %s3695_s8 }
  0x2b   : > { %s296_s19 = scalar_lea.hbm %s4599_s0, %s3290_s12  ;;  %s3697_s6 = scalar_lea.vmem %s3696_s8, 1024 }
  0x2c   : > { %p3694_p7 = pneg %p3693_p6  ;;  %p3698_p11 = scmp.lt.s32.totalorder %s298_s24, %s3696_s8 }
  0x2d   : > { %p3699_p2 = scmp.lt.s32.totalorder %s3697_s6, %s3690_s16 }
  0x2f   : > { %p3700_p5 = por %p3699_p2, %p3698_p11 }
  0x31   : > { %p3701_p3 = pnand %p3700_p5, %p3694_p7 }
  0x33   : > { %3704 = shalt.err (!%p3701_p3)
}
  0x34   : > { %s3860_s11 = smov 256   ;;  %s4583_s12 = smov 128  }
  0x35   : > { %s4584_s22 = smov 8   ;;  %p333_p2 = scmp.lt.s32.totalorder %s3857_s15, 5 }
  0x36   : > { %3564 = dma.hbm_to_vmem [thread:$0]  (!%p4028_p13), %s296_s19, 512, %s298_s24, %s286_s20, %s3860_s11, %s4583_s12, %s4584_s22  }
  0x37   : > { %p4042_p5 = pnand %p3294_p0, %p333_p2  ;;  %s4602_s26 = sadd.s32 4294967295, %s3857_s15  }
  0x38   : > { %p62_p1 = scmp.eq.s32.totalorder %s4602_s26, 0  ;;  %s74_s17 = sadd.s32 1, %s3825_s29 }
  0x39   : > { %s4052_s16 = scalar_select %p72_p10, %s3825_s29, %s74_s17  }
  0x3a   : > { %p4603_p4 = scmp.ne.s32.totalorder %s3833_s9, %s3829_s30  ;;  %p81_p7 = scmp.ne.s32.totalorder %s3825_s29, %s3821_s28 }
  0x3b   : > { %p87_p13 = scmp.ne.s32.totalorder %s3821_s28, %s3817_s27  ;;  %s307_s19 = sand.u32 1, %s3825_s29  }
  0x3c   : > { %p4057_p6 = por %p62_p1, %p4603_p4  ;;  %p4605_p11 = scmp.eq.s32.totalorder %s3857_s15, 0 }
  0x3d   : > { %p4068_p3 = por %p87_p13, %p62_p1  ;;  %s3291_s21 = sshll.u32 %s307_s19, 5 }
  0x3e   : > { %p83_p0 = por %p81_p7, %p4605_p11  ;;  %s3358_s20 = sshll.u32 %s3853_s14, 9 }
  0x3f   : > { %s317_s6 = scalar_lea.hbm %s4565_s1, %s3358_s20  ;;  %s311_s11 = scalar_lea.vmem [#allocation7], %s3291_s21 }
  0x40   : > { %s318_s26 = sshll.u32 %s311_s11, 4  ;;  %p4078_p10 = pnand %p3572_p12, %p83_p0  ;;  %s319_s26 = int_to_ptr.vmem [resolvable:$true] %s318_s26 }
  0x41   : > { %s308_s27 = scalar_lea.sflag [#allocation8], %s307_s19  ;;  %s3718_s12 = scalar_lea.vmem %s319_s26, 512 }
  0x42   : > { %p3707_p2 = pneg %p4078_p10  ;;  %p3719_p1 = scmp.ne.s32.totalorder %s319_s26, %s3718_s12 }
  0x43   : > { %s3863_s22 = smov [#allocation7]  }
  0x44   : > { %p3721_p4 = pnand %p3719_p1, %p3707_p2  ;;  %s3723_s0 = sshll.u32 %s3863_s22, 4  ;;  %s3724_s0 = int_to_ptr.vmem [resolvable:$false] %s3723_s0 }
  0x45   : > { %s3725_s20 = scalar_lea.vmem %s3724_s0, 1024  ;;  %p3726_p13 = scmp.lt.s32.totalorder %s319_s26, %s3724_s0 }
  0x46   : > { %p3722_p7 = pneg %p3721_p4  ;;  %p3727_p11 = scmp.lt.s32.totalorder %s3725_s20, %s3718_s12 }
  0x48   : > { %p3728_p9 = por %p3727_p11, %p3726_p13 }
  0x4a   : > { %p3729_p8 = pnand %p3728_p9, %p3722_p7 }
  0x4c   : > { %3732 = shalt.err (!%p3729_p8)
}
  0x4d   : > { %s4608_s21 = smov 8   ;;  %s4609_s8 = smov 128  }
  0x4e   : > { %3567 = dma.hbm_to_vmem [thread:$0]  (!%p4078_p10), %s317_s6, 512, %s319_s26, %s308_s27, %s4609_s8, %s4609_s8, %s4608_s21  }
  0x4f   : > { %337 = sbr.rel (%p4042_p5) target bundleno = 782 (0x30e), region = 52  ;;  %s4092_s19 = sand.u32 (!%p4042_p5), 1, %s3833_s9  }
  0x50   : > { %s3295_s0 = sshll.u32 (!%p4042_p5), %s4092_s19, 5  ;;  %s340_s12 = scalar_lea.sflag (!%p4042_p5), [#allocation5], %s4092_s19 }
  0x51   : > { %s4098_s22 = scalar_lea.vmem (!%p4042_p5), [#allocation4], %s3295_s0 }
  0x54   : > { %3804 = dma.done.wait (%p4057_p6), %s340_s12, 512  }
  0x55   : > { %3806 = vsyncadd (%p4057_p6), %s340_s12, 4294966784  ;;  %s348_s23 = sand.u32 1, %s3821_s28  }
  0x56   : > { %s3296_s25 = sshll.u32 %s348_s23, 5  ;;  %s349_s6 = scalar_lea.sflag [#allocation8], %s348_s23 }
  0x57   : > { %s4105_s11 = scalar_lea.vmem [#allocation7], %s3296_s25 }
  0x58   : > { %3808 = dma.done.wait (%p4068_p3), %s349_s6, 512  }
  0x59   : > { %3810 = vsyncadd (%p4068_p3), %s349_s6, 4294966784  ;;  %v3864_v0 = vmov 0.0   ;;  %vm3865_vm0 = vmmov 0   ;;  %v3866_v1 = vmov 0   ;;  %vm418_vm1 = vcmask 1041409   ;;  %s4610_s12 = sld [smem:[#allocation13_spill]] }
  0x5a   : > { %3415 = vmatprep.subr.mxu0 %v3864_v0  ;;  %3420 = vmatprep.subr.mxu1 %v3864_v0  ;;  %vm421_vm2 = vcmask 1042434   ;;  %vm424_vm3 = vcmask 1043459   ;;  %v404_v2 = vld [vmem:[%s4098_s22] sm:$0x1]  ;;  %v405_v3 = vld [vmem:[%s4098_s22 + $0x8] sm:$0x1] }
  0x5b   : > { %3417 = vmatprep.mubr.msk.f32.mxu0 %vm3865_vm0, %v3864_v0  ;;  %3422 = vmatprep.mubr.msk.f32.mxu1 %vm3865_vm0, %v3864_v0  ;;  %v406_v4 = vld [vmem:[%s4098_s22 + $0x10] sm:$0x1]  ;;  %v407_v5 = vld [vmem:[%s4098_s22 + $0x18] sm:$0x1]  ;;  %v417_v6 = vrot.slane %v405_v3, 7  ;;  %vm430_vm4 = vcmask 1043456  }
  0x5c   : > { %3672 = vset.pattern.permute.xlu0 %v3866_v1  ;;  %v420_v7 = vrot.slane %v406_v4, 6  ;;  %v531_v8 = vld [vmem:[%s4098_s22 + $0x1] sm:$0x1]  ;;  %v423_v9 = vrot.slane %v407_v5, 5  ;;  %v532_v10 = vld [vmem:[%s4098_s22 + $0x9] sm:$0x1] }
  0x5d   : > { %v533_v11 = vld [vmem:[%s4098_s22 + $0x11] sm:$0x1]  ;;  %v419_v12 = vsel %vm418_vm1, %v417_v6, %v404_v2  ;;  %v534_v13 = vld [vmem:[%s4098_s22 + $0x19] sm:$0x1]  ;;  %v539_v14 = vrot.slane %v532_v10, 7  ;;  %vm426_vm5 = vcmask 31744  }
  0x5e   : > { %v541_v15 = vrot.slane %v533_v11, 6  ;;  %v4129_v16 = vld [vmem:[%s4566_s2] sm:$0x3]  ;;  %v422_v17 = vsel %vm421_vm2, %v420_v7, %v419_v12  ;;  %v543_v18 = vrot.slane %v534_v13, 5  ;;  %v644_v19 = vld [vmem:[%s4098_s22 + $0x2] sm:$0x1] }
  0x5f   : > { %v645_v20 = vld [vmem:[%s4098_s22 + $0xa] sm:$0x1]  ;;  %v425_v21 = vsel %vm424_vm3, %v423_v9, %v422_v17  ;;  %v540_v22 = vsel %vm418_vm1, %v539_v14, %v531_v8  ;;  %v646_v23 = vld [vmem:[%s4098_s22 + $0x12] sm:$0x1]  ;;  %v647_v24 = vld [vmem:[%s4098_s22 + $0x1a] sm:$0x1] }
  0x60   : > { %v652_v25 = vrot.slane %v645_v20, 7  ;;  %3416 = vmatpush3.msk.msra.mxu0 %vm430_vm4, %v425_v21  ;;  %v542_v26 = vsel %vm421_vm2, %v541_v15, %v540_v22  ;;  %v654_v27 = vrot.slane %v646_v23, 6  ;;  %v656_v28 = vrot.slane %v647_v24, 5  ;;  %v757_v29 = vld [vmem:[%s4098_s22 + $0x3] sm:$0x1]  ;;  %p394_p8 = scmp.lt.s32.totalorder %s4610_s12, 1 }
  0x61   : > { %v758_v30 = vld [vmem:[%s4098_s22 + $0xb] sm:$0x1]  ;;  %v544_v31 = vsel %vm424_vm3, %v543_v18, %v542_v26  ;;  %3418 = vmatmul.mubr.msk.f32.vlgmr.msra.gmra.mxu0 %vm426_vm5, %v4129_v16  ;;  %3425 = vmatprep.subr.mxu0 %v3864_v0  ;;  %v759_v33 = vld [vmem:[%s4098_s22 + $0x13] sm:$0x1]  ;;  %v760_v34 = vld [vmem:[%s4098_s22 + $0x1b] sm:$0x1] }
  0x62   : > { %v653_v32 = vsel %vm418_vm1, %v652_v25, %v644_v19  ;;  %v765_v35 = vrot.slane %v758_v30, 7  ;;  %3421 = vmatpush3.msk.msra.mxu1 %vm430_vm4, %v544_v31  ;;  %3427 = vmatprep.mubr.msk.f32.mxu0 %vm3865_vm0, %v3864_v0  ;;  %v767_v37 = vrot.slane %v759_v33, 6  ;;  %v769_v38 = vrot.slane %v760_v34, 5  ;;  %v870_v39 = vld [vmem:[%s4098_s22 + $0x4] sm:$0x1]  ;;  %s395_s23 = scalar_select %p394_p8, %s4610_s12, 1 }
  0x63   : > { %v655_v36 = vsel %vm421_vm2, %v654_v27, %v653_v32  ;;  %v871_v40 = vld [vmem:[%s4098_s22 + $0xc] sm:$0x1]  ;;  %3423 = vmatmul.mubr.msk.f32.vlgmr.msra.gmra.mxu1 %vm426_vm5, %v4129_v16  ;;  %3430 = vmatprep.subr.mxu1 %v3864_v0  ;;  %v872_v43 = vld [vmem:[%s4098_s22 + $0x14] sm:$0x1]  ;;  %v873_v44 = vld [vmem:[%s4098_s22 + $0x1c] sm:$0x1] }
  0x64   : > { %v657_v41 = vsel %vm424_vm3, %v656_v28, %v655_v36  ;;  %v766_v42 = vsel %vm418_vm1, %v765_v35, %v757_v29  ;;  %v878_v45 = vrot.slane %v871_v40, 7  ;;  %3432 = vmatprep.mubr.msk.f32.mxu1 %vm3865_vm0, %v3864_v0  ;;  %v880_v47 = vrot.slane %v872_v43, 6  ;;  %v983_v49 = vld [vmem:[%s4098_s22 + $0x5] sm:$0x1]  ;;  %v984_v50 = vld [vmem:[%s4098_s22 + $0xd] sm:$0x1] }
  0x65   : > { %3426 = vmatpush3.msk.msra.mxu0 %vm430_vm4, %v657_v41  ;;  %v768_v46 = vsel %vm421_vm2, %v767_v37, %v766_v42  ;;  %v882_v48 = vrot.slane %v873_v44, 5  ;;  %v985_v53 = vld [vmem:[%s4098_s22 + $0x15] sm:$0x1]  ;;  %v986_v54 = vld [vmem:[%s4098_s22 + $0x1d] sm:$0x1]  ;;  %v991_v55 = vrot.slane %v984_v50, 7 }
  0x66   : > { %v770_v51 = vsel %vm424_vm3, %v769_v38, %v768_v46  ;;  %3428 = vmatmul.mubr.msk.f32.vlgmr.msra.gmra.mxu0 %vm426_vm5, %v4129_v16  ;;  %3435 = vmatprep.subr.mxu0 %v3864_v0  ;;  %v879_v52 = vsel %vm418_vm1, %v878_v45, %v870_v39  ;;  %v993_v57 = vrot.slane %v985_v53, 6  ;;  %v995_v58 = vrot.slane %v986_v54, 5  ;;  %v1096_v59 = vld [vmem:[%s4098_s22 + $0x6] sm:$0x1]  ;;  %v1097_v60 = vld [vmem:[%s4098_s22 + $0xe] sm:$0x1] }
  0x67   : > { %3431 = vmatpush3.msk.msra.mxu1 %vm430_vm4, %v770_v51  ;;  %v881_v56 = vsel %vm421_vm2, %v880_v47, %v879_v52  ;;  %3437 = vmatprep.mubr.msk.f32.mxu0 %vm3865_vm0, %v3864_v0  ;;  %v992_v62 = vsel %vm418_vm1, %v991_v55, %v983_v49  ;;  %v1098_v63 = vld [vmem:[%s4098_s22 + $0x16] sm:$0x1]  ;;  %v1099_v1 = vld [vmem:[%s4098_s22 + $0x1e] sm:$0x1]  ;;  %v1104_v2 = vrot.slane %v1097_v60, 7  ;;  %vm528_vm6 = vcmask 122880  }
  0x68   : > { %3433 = vmatmul.mubr.msk.f32.vlgmr.msra.gmra.mxu1 %vm426_vm5, %v4129_v16  ;;  %3440 = vmatprep.subr.mxu1 %v3864_v0  ;;  %v883_v61 = vsel %vm424_vm3, %v882_v48, %v881_v56  ;;  %v994_v3 = vsel %vm421_vm2, %v993_v57, %v992_v62  ;;  %v1106_v4 = vrot.slane %v1098_v63, 6  ;;  %v1108_v5 = vrot.slane %v1099_v1, 5  ;;  %v1209_v6 = vld [vmem:[%s4098_s22 + $0x7] sm:$0x1]  ;;  %v1210_v7 = vld [vmem:[%s4098_s22 + $0xf] sm:$0x1] }
  0x69   : > { %3436 = vmatpush3.msk.msra.mxu0 %vm430_vm4, %v883_v61  ;;  %3442 = vmatprep.mubr.msk.f32.mxu1 %vm3865_vm0, %v3864_v0  ;;  %v996_v8 = vsel %vm424_vm3, %v995_v58, %v994_v3  ;;  %v1105_v9 = vsel %vm418_vm1, %v1104_v2, %v1096_v59  ;;  %v1211_v10 = vld [vmem:[%s4098_s22 + $0x17] sm:$0x1]  ;;  %v1212_v11 = vld [vmem:[%s4098_s22 + $0x1f] sm:$0x1]  ;;  %v1217_v12 = vrot.slane %v1210_v7, 7  ;;  %vm1441_vm7 = vcmask 57344  }
  0x6a   : > { %3438 = vmatmul.mubr.msk.f32.vlgmr.msra.gmra.mxu0 %vm426_vm5, %v4129_v16  ;;  %3445 = vmatprep.subr.mxu0 %v3864_v0  ;;  %v1107_v13 = vsel %vm421_vm2, %v1106_v4, %v1105_v9  ;;  %v1219_v14 = vrot.slane %v1211_v10, 6  ;;  %v1221_v15 = vrot.slane %v1212_v11, 5  ;;  %v1322_v17 = vld [vmem:[%s4105_s11] sm:$0x1]  ;;  %v1323_v18 = vld [vmem:[%s4105_s11 + $0x8] sm:$0x1] }
  0x6b   : > { %3441 = vmatpush3.msk.msra.mxu1 %vm430_vm4, %v996_v8  ;;  %3447 = vmatprep.mubr.msk.f32.mxu0 %vm3865_vm0, %v3864_v0  ;;  %v1109_v19 = vsel %vm424_vm3, %v1108_v5, %v1107_v13  ;;  %v1218_v20 = vsel %vm418_vm1, %v1217_v12, %v1209_v6  ;;  %v1324_v21 = vld [vmem:[%s4105_s11 + $0x10] sm:$0x1]  ;;  %v1325_v22 = vld [vmem:[%s4105_s11 + $0x18] sm:$0x1]  ;;  %v1335_v23 = vrot.slane %v1323_v18, 7  ;;  %s3298_s25 = sshll.u32 %s395_s23, 3 }
  0x6c   : > { %3443 = vmatmul.mubr.msk.f32.vlgmr.msra.gmra.mxu1 %vm426_vm5, %v4129_v16  ;;  %3450 = vmatprep.subr.mxu1 %v3864_v0  ;;  %v1220_v24 = vsel %vm421_vm2, %v1219_v14, %v1218_v20  ;;  %v1337_v25 = vrot.slane %v1324_v21, 6  ;;  %v1339_v26 = vrot.slane %v1325_v22, 5  ;;  %v1444_v27 = vld [vmem:[%s4105_s11 + $0x1] sm:$0x1]  ;;  %v1445_v28 = vld [vmem:[%s4105_s11 + $0x9] sm:$0x1] }
  0x6d   : > { %3446 = vmatpush3.msk.msra.mxu0 %vm430_vm4, %v1109_v19  ;;  %3452 = vmatprep.mubr.msk.f32.mxu1 %vm3865_vm0, %v3864_v0  ;;  %v1222_v29 = vsel %vm424_vm3, %v1221_v15, %v1220_v24  ;;  %v1336_v30 = vsel %vm418_vm1, %v1335_v23, %v1322_v17  ;;  %v1446_v31 = vld [vmem:[%s4105_s11 + $0x11] sm:$0x1]  ;;  %v1447_v32 = vld [vmem:[%s4105_s11 + $0x19] sm:$0x1]  ;;  %v1452_v33 = vrot.slane %v1445_v28, 7  ;;  %s4611_s24 = sld [smem:[#allocation20_spill]] }
  0x6e   : > { %3448 = vmatmul.mubr.msk.f32.vlgmr.msra.gmra.mxu0 %vm426_vm5, %v4129_v16  ;;  %3455 = vmatprep.subr.mxu0 %v3864_v0  ;;  %v1338_v34 = vsel %vm421_vm2, %v1337_v25, %v1336_v30  ;;  %v1454_v35 = vrot.slane %v1446_v31, 6  ;;  %v1456_v36 = vrot.slane %v1447_v32, 5  ;;  %v4234_v37 = vld [vmem:[%s4568_s4] sm:$0x3]  ;;  %v1557_v38 = vld [vmem:[%s4105_s11 + $0x2] sm:$0x1] }
  0x6f   : > { %3451 = vmatpush3.msk.msra.mxu1 %vm430_vm4, %v1222_v29  ;;  %3457 = vmatprep.mubr.msk.f32.mxu0 %vm3865_vm0, %v3864_v0  ;;  %v1340_v39 = vsel %vm424_vm3, %v1339_v26, %v1338_v34  ;;  %v1453_v40 = vsel %vm418_vm1, %v1452_v33, %v1444_v27  ;;  %v1558_v41 = vld [vmem:[%s4105_s11 + $0xa] sm:$0x1]  ;;  %v1559_v42 = vld [vmem:[%s4105_s11 + $0x12] sm:$0x1]  ;;  %v1560_v43 = vld [vmem:[%s4105_s11 + $0x1a] sm:$0x1] }
  0x70   : > { %3453 = vmatmul.mubr.msk.f32.vlgmr.msra.gmra.mxu1 %vm426_vm5, %v4129_v16  ;;  %3460 = vmatprep.subr.mxu1 %v3864_v0  ;;  %v1455_v44 = vsel %vm421_vm2, %v1454_v35, %v1453_v40  ;;  %v1565_v16 = vrot.slane %v1558_v41, 7  ;;  %v1567_v45 = vrot.slane %v1559_v42, 6  ;;  %v1569_v46 = vrot.slane %v1560_v43, 5  ;;  %v1670_v47 = vld [vmem:[%s4105_s11 + $0x3] sm:$0x1]  ;;  %s4612_s20 = sld [smem:[#allocation21_spill]] }
  0x71   : > { %3456 = vmatpush3.msk.msra.mxu0 %vm430_vm4, %v1340_v39  ;;  %3462 = vmatprep.mubr.msk.f32.mxu1 %vm3865_vm0, %v3864_v0  ;;  %v1457_v48 = vsel %vm424_vm3, %v1456_v36, %v1455_v44  ;;  %v1671_v49 = vld [vmem:[%s4105_s11 + $0xb] sm:$0x1]  ;;  %v1672_v50 = vld [vmem:[%s4105_s11 + $0x13] sm:$0x1]  ;;  %v1673_v51 = vld [vmem:[%s4105_s11 + $0x1b] sm:$0x1]  ;;  %v507_v44 = vlaneseq }
  0x72   : > { %3458 = vmatmul.mubr.msk.f32.vlgmr.msra.gmra.mxu0 %vm426_vm5, %v4234_v37  ;;  %3465 = vmatprep.subr.mxu0 %v3864_v0  ;;  %v1566_v52 = vsel %vm418_vm1, %v1565_v16, %v1557_v38  ;;  %v1678_v53 = vrot.slane %v1671_v49, 7  ;;  %v1680_v54 = vrot.slane %v1672_v50, 6  ;;  %v1682_v55 = vrot.slane %v1673_v51, 5  ;;  %v1783_v56 = vld [vmem:[%s4105_s11 + $0x4] sm:$0x1]  ;;  %s393_s23 = scalar_lea.vmem [#allocation9], %s3295_s0 }
  0x73   : > { %3461 = vmatpush3.msk.msra.mxu1 %vm430_vm4, %v1457_v48  ;;  %3467 = vmatprep.mubr.msk.f32.mxu0 %vm3865_vm0, %v3864_v0  ;;  %v1568_v57 = vsel %vm421_vm2, %v1567_v45, %v1566_v52  ;;  %v1784_v58 = vld [vmem:[%s4105_s11 + $0xc] sm:$0x1]  ;;  %v1785_v59 = vld [vmem:[%s4105_s11 + $0x14] sm:$0x1]  ;;  %v1786_v60 = vld [vmem:[%s4105_s11 + $0x1c] sm:$0x1]  ;;  %s397_s26 = scalar_lea.vmem %s4611_s24, %s3298_s25 }
  0x74   : > { %3463 = vmatmul.mubr.msk.f32.vlgmr.msra.gmra.mxu1 %vm426_vm5, %v4234_v37  ;;  %3470 = vmatprep.subr.mxu1 %v3864_v0  ;;  %v1570_v61 = vsel %vm424_vm3, %v1569_v46, %v1568_v57  ;;  %v1679_v62 = vsel %vm418_vm1, %v1678_v53, %v1670_v47  ;;  %v1791_v63 = vrot.slane %v1784_v58, 7  ;;  %v1793_v1 = vrot.slane %v1785_v59, 6  ;;  %v1896_v2 = vld [vmem:[%s4105_s11 + $0x5] sm:$0x1]  ;;  %v1897_v3 = vld [vmem:[%s4105_s11 + $0xd] sm:$0x1] }
  0x75   : > { %3472 = vmatprep.mubr.msk.f32.mxu1 %vm3865_vm0, %v3864_v0  ;;  %3466 = vmatpush3.msk.msra.mxu0 %vm430_vm4, %v1570_v61  ;;  %v1681_v4 = vsel %vm421_vm2, %v1680_v54, %v1679_v62  ;;  %v1795_v5 = vrot.slane %v1786_v60, 5  ;;  %v1898_v6 = vld [vmem:[%s4105_s11 + $0x15] sm:$0x1]  ;;  %v1899_v7 = vld [vmem:[%s4105_s11 + $0x1d] sm:$0x1]  ;;  %v1904_v8 = vrot.slane %v1897_v3, 7 }
  0x76   : > { %v1683_v9 = vsel %vm424_vm3, %v1682_v55, %v1681_v4  ;;  %3468 = vmatmul.mubr.msk.f32.vlgmr.msra.gmra.mxu0 %vm426_vm5, %v4234_v37  ;;  %3475 = vmatprep.subr.mxu0 %v3864_v0  ;;  %v1792_v10 = vsel %vm418_vm1, %v1791_v63, %v1783_v56  ;;  %v1906_v11 = vrot.slane %v1898_v6, 6  ;;  %v1908_v12 = vrot.slane %v1899_v7, 5  ;;  %v2009_v13 = vld [vmem:[%s4105_s11 + $0x6] sm:$0x1]  ;;  %v2010_v14 = vld [vmem:[%s4105_s11 + $0xe] sm:$0x1] }
  0x77   : > { %3471 = vmatpush3.msk.msra.mxu1 %vm430_vm4, %v1683_v9  ;;  %v1794_v15 = vsel %vm421_vm2, %v1793_v1, %v1792_v10  ;;  %3477 = vmatprep.mubr.msk.f32.mxu0 %vm3865_vm0, %v3864_v0  ;;  %v1905_v17 = vsel %vm418_vm1, %v1904_v8, %v1896_v2  ;;  %v2011_v18 = vld [vmem:[%s4105_s11 + $0x16] sm:$0x1]  ;;  %v2012_v19 = vld [vmem:[%s4105_s11 + $0x1e] sm:$0x1]  ;;  %v2017_v20 = vrot.slane %v2010_v14, 7  ;;  %vm2237_vm8 = vcmask 64512  }
  0x78   : > { %3473 = vmatmul.mubr.msk.f32.vlgmr.msra.gmra.mxu1 %vm426_vm5, %v4234_v37  ;;  %3480 = vmatprep.subr.mxu1 %v3864_v0  ;;  %v1796_v21 = vsel %vm424_vm3, %v1795_v5, %v1794_v15  ;;  %v1907_v22 = vsel %vm421_vm2, %v1906_v11, %v1905_v17  ;;  %v2019_v23 = vrot.slane %v2011_v18, 6  ;;  %v2021_v24 = vrot.slane %v2012_v19, 5  ;;  %v2122_v25 = vld [vmem:[%s4105_s11 + $0x7] sm:$0x1]  ;;  %v2123_v26 = vld [vmem:[%s4105_s11 + $0xf] sm:$0x1] }
  0x79   : > { %3476 = vmatpush3.msk.msra.mxu0 %vm430_vm4, %v1796_v21  ;;  %v1909_v27 = vsel %vm424_vm3, %v1908_v12, %v1907_v22  ;;  %3482 = vmatprep.mubr.msk.f32.mxu1 %vm3865_vm0, %v3864_v0  ;;  %v2018_v28 = vsel %vm418_vm1, %v2017_v20, %v2009_v13  ;;  %v2124_v29 = vld [vmem:[%s4105_s11 + $0x17] sm:$0x1]  ;;  %v2125_v30 = vld [vmem:[%s4105_s11 + $0x1f] sm:$0x1]  ;;  %v2130_v31 = vrot.slane %v2123_v26, 7  ;;  %s3161_s25 = sshll.u32 %s393_s23, 4  ;;  %s4497_s25 = int_to_ptr.vmem [resolvable:$true] %s3161_s25 }
  0x7a   : > { %3481 = vmatpush3.msk.msra.mxu1 %vm430_vm4, %v1909_v27  ;;  %3478 = vmatmul.mubr.msk.f32.vlgmr.msra.gmra.mxu0 %vm426_vm5, %v4234_v37  ;;  %v2020_v32 = vsel %vm421_vm2, %v2019_v23, %v2018_v28  ;;  %v2132_v33 = vrot.slane %v2124_v29, 6  ;;  %v2134_v34 = vrot.slane %v2125_v30, 5  ;;  %v401_v39 = vld [vmem:[%s4569_s5] sm:$0x3]  ;;  %v3867_v42 = vmov 1966171168  }
  0x7b   : > { %3485 = vmatprep.subr.mxu0 %v3864_v0  ;;  %3490 = vmatprep.subr.mxu1 %v3864_v0  ;;  %v2022_v35 = vsel %vm424_vm3, %v2021_v24, %v2020_v32  ;;  %v2131_v36 = vsel %vm418_vm1, %v2130_v31, %v2122_v25  ;;  %v400_v41 = vld [vmem:[%s4567_s3] sm:$0x3]  ;;  %v505_v43 = vunpack.c.l.s4 %v3867_v42  ;;  %s4614_s7 = sld [smem:[#allocation17_spill]]  ;;  %vm2688_vm9 = vcmask 130048   ;;  %s3733_s17 = scalar_lea.vmem %s4497_s25, 512 }
  0x7c   : > { %3483 = vmatmul.mubr.msk.f32.vlgmr.msra.gmra.mxu1 %vm426_vm5, %v4234_v37  ;;  %3486 = vmatpush3.msk.msra.mxu0 %vm430_vm4, %v2022_v35  ;;  %v2133_v38 = vsel %vm421_vm2, %v2132_v33, %v2131_v36  ;;  %s4615_s0 = sld [smem:[#allocation22_spill]]  ;;  %p3734_p9 = scmp.ne.s32.totalorder %s4497_s25, %s3733_s17 }
  0x7d   : > { %3487 = vmatprep.mubr.msk.f32.mxu0 %vm3865_vm0, %v3864_v0  ;;  %v2135_v40 = vsel %vm424_vm3, %v2134_v34, %v2133_v38  ;;  %3492 = vmatprep.mubr.msk.f32.mxu1 %vm3865_vm0, %v3864_v0  ;;  %v506_v45 = vunpack.c.0.s8 %v505_v43  ;;  %s3868_s27 = smov [#allocation9]  }
  0x7e   : > { %3491 = vmatpush3.msk.msra.mxu1 %vm430_vm4, %v2135_v40  ;;  %3488 = vmatmul.mubr.msk.f32.vlgmr.msra.gmra.mxu0 %vm426_vm5, %v4234_v37 }
  0x7f   : > { %1328 = vperm.xlu0 %3672, %v401_v39   ;;  %3495 = vmatprep.subr.mxu0 %v3864_v0 }
  0x80   : > { %3493 = vmatmul.mubr.msk.f32.vlgmr.msra.gmra.mxu1 %vm426_vm5, %v4234_v37  ;;  %3497 = vmatprep.mubr.msk.f32.mxu0 %vm3865_vm0, %v3864_v0  ;;  %v508_v37 = vshrl.u32 %v507_v44, 7 }
  0x81   : > { %3500 = vmatprep.subr.mxu1 %v3864_v0  ;;  %3502 = vmatprep.mubr.msk.f32.mxu1 %vm3865_vm0, %v3864_v0  ;;  %p4616_p12 = scmp.ne.s32.totalorder %s4614_s7, 0 }
  0x82   : > { %v4343_v47 = vsub.s32 %v506_v45, %v508_v37 }
  0x83   : > { %410 = vperm.xlu0 %3672, %v400_v41   ;;  %p3735_p5 = pnand %p3734_p9, %p4616_p12 }
  0x85   : > { %p3736_p6 = pneg %p3735_p5 }
  0xfa   : > { %v4341_v16 = vpop.permute.xlu0 %1328 }
  0xfe   : > { %v411_v46 = vpop.permute.xlu0 %410 }
 0x121   : > { %v499_v48 = vpop.f32.mrf.mxu0 }
 0x122   : > { %v500_v49 = vadd.f32 %v499_v48, %v411_v46 }
 0x123   : > { %v613_v50 = vpop.f32.mrf.mxu1  ;;  %v3419_v51 = vpop.f32.mrf.mxu0 }
 0x124   : > { %v510_v52 = vrot.slane %v500_v49, %v4343_v47  ;;  %v614_v53 = vadd.f32 %v613_v50, %v411_v46 }
 0x125   : > { %v3424_v54 = vpop.f32.mrf.mxu1 }
 0x126   : > { %v726_v55 = vpop.f32.mrf.mxu0  ;;  %v511_v56 = vcombine.high %v510_v52, %v510_v52  ;;  %v518_v57 = vrot.slane %v510_v52, %v4343_v47  ;;  %v624_v58 = vrot.slane %v614_v53, %v4343_v47 }
 0x127   : > { %v727_v59 = vadd.f32 %v726_v55, %v411_v46 }
 0x128   : > { %v839_v60 = vpop.f32.mrf.mxu1  ;;  %v3429_v61 = vpop.f32.mrf.mxu0  ;;  %v525_v62 = vrot.slane %v511_v56, %v4343_v47  ;;  %529 = vst.msk [vmem:[#allocation2] sm:$0x1] %vm528_vm6, %v518_v57  ;;  %v625_v63 = vcombine.high %v624_v58, %v624_v58  ;;  %v632_v1 = vrot.slane %v624_v58, %v4343_v47 }
 0x129   : > { %v737_v2 = vrot.slane %v727_v59, %v4343_v47  ;;  %v840_v3 = vadd.f32 %v839_v60, %v411_v46 }
 0x12a   : > { %v3434_v4 = vpop.f32.mrf.mxu1  ;;  %v952_v5 = vpop.f32.mrf.mxu0  ;;  %530 = vst.msk [vmem:[#allocation2 + $0x8] sm:$0x1] %vm528_vm6, %v525_v62  ;;  %v639_v6 = vrot.slane %v625_v63, %v4343_v47  ;;  %642 = vst.msk [vmem:[#allocation2 + $0x1] sm:$0x1] %vm528_vm6, %v632_v1 }
 0x12b   : > { %v738_v7 = vcombine.high %v737_v2, %v737_v2  ;;  %v745_v8 = vrot.slane %v737_v2, %v4343_v47  ;;  %v953_v9 = vadd.f32 %v952_v5, %v411_v46  ;;  %v850_v10 = vrot.slane %v840_v3, %v4343_v47 }
 0x12c   : > { %v1065_v11 = vpop.f32.mrf.mxu1  ;;  %v3439_v12 = vpop.f32.mrf.mxu0  ;;  %643 = vst.msk [vmem:[#allocation2 + $0x9] sm:$0x1] %vm528_vm6, %v639_v6 }
 0x12d   : > { %v752_v13 = vrot.slane %v738_v7, %v4343_v47  ;;  %755 = vst.msk [vmem:[#allocation2 + $0x2] sm:$0x1] %vm528_vm6, %v745_v8  ;;  %v963_v14 = vrot.slane %v953_v9, %v4343_v47  ;;  %v1066_v15 = vadd.f32 %v1065_v11, %v411_v46  ;;  %v851_v17 = vcombine.high %v850_v10, %v850_v10 }
 0x12e   : > { %v858_v18 = vrot.slane %v850_v10, %v4343_v47  ;;  %v3444_v19 = vpop.f32.mrf.mxu1  ;;  %v1178_v20 = vpop.f32.mrf.mxu0 }
 0x12f   : > { %756 = vst.msk [vmem:[#allocation2 + $0xa] sm:$0x1] %vm528_vm6, %v752_v13  ;;  %v964_v21 = vcombine.high %v963_v14, %v963_v14  ;;  %v971_v22 = vrot.slane %v963_v14, %v4343_v47  ;;  %v1076_v23 = vrot.slane %v1066_v15, %v4343_v47  ;;  %v1179_v24 = vadd.f32 %v1178_v20, %v411_v46 }
 0x130   : > { %v865_v25 = vrot.slane %v851_v17, %v4343_v47  ;;  %868 = vst.msk [vmem:[#allocation2 + $0x3] sm:$0x1] %vm528_vm6, %v858_v18  ;;  %v1291_v26 = vpop.f32.mrf.mxu1  ;;  %v3449_v27 = vpop.f32.mrf.mxu0 }
 0x131   : > { %v978_v28 = vrot.slane %v964_v21, %v4343_v47  ;;  %981 = vst.msk [vmem:[#allocation2 + $0x4] sm:$0x1] %vm528_vm6, %v971_v22  ;;  %v1077_v29 = vcombine.high %v1076_v23, %v1076_v23  ;;  %v1084_v30 = vrot.slane %v1076_v23, %v4343_v47  ;;  %v1189_v31 = vrot.slane %v1179_v24, %v4343_v47 }
 0x132   : > { %869 = vst.msk [vmem:[#allocation2 + $0xb] sm:$0x1] %vm528_vm6, %v865_v25  ;;  %v1292_v32 = vadd.f32 %v1291_v26, %v411_v46  ;;  %v3454_v33 = vpop.f32.mrf.mxu1  ;;  %v1412_v34 = vpop.f32.mrf.mxu0 }
 0x133   : > { %982 = vst.msk [vmem:[#allocation2 + $0xc] sm:$0x1] %vm528_vm6, %v978_v28  ;;  %v1091_v35 = vrot.slane %v1077_v29, %v4343_v47  ;;  %1094 = vst.msk [vmem:[#allocation2 + $0x5] sm:$0x1] %vm528_vm6, %v1084_v30  ;;  %v1190_v36 = vcombine.high %v1189_v31, %v1189_v31  ;;  %v1197_v38 = vrot.slane %v1189_v31, %v4343_v47 }
 0x134   : > { %v1413_v39 = vadd.f32 %v1412_v34, %v4341_v16  ;;  %v1302_v40 = vrot.slane %v1292_v32, %v4343_v47  ;;  %v1526_v41 = vpop.f32.mrf.mxu1  ;;  %v3459_v42 = vpop.f32.mrf.mxu0 }
 0x135   : > { %1095 = vst.msk [vmem:[#allocation2 + $0xd] sm:$0x1] %vm528_vm6, %v1091_v35  ;;  %v1204_v43 = vrot.slane %v1190_v36, %v4343_v47  ;;  %1207 = vst.msk [vmem:[#allocation2 + $0x6] sm:$0x1] %vm528_vm6, %v1197_v38  ;;  %v1527_v45 = vadd.f32 %v1526_v41, %v4341_v16  ;;  %v402_v36 = vld [vmem:[%s397_s26] sm:$0xff]  ;;  %v3344_v41 = vld [vmem:[%s4105_s11 + $0x10] sm:$0xff] }
 0x136   : > { %v1423_v44 = vrot.slane %v1413_v39, %v4343_v47  ;;  %v1303_v37 = vcombine.high %v1302_v40, %v1302_v40  ;;  %v1310_v46 = vrot.slane %v1302_v40, %v4343_v47  ;;  %v3464_v48 = vpop.f32.mrf.mxu1  ;;  %v1639_v52 = vpop.f32.mrf.mxu0  ;;  %v2541_v39 = vld [vmem:[%s4105_s11] sm:$0xff]  ;;  %v3339_v40 = vld [vmem:[%s4105_s11 + $0x8] sm:$0xff]  ;;  %v3349_v42 = vld [vmem:[%s4105_s11 + $0x18] sm:$0xff]  ;;  %s4613_s11 = sld [smem:[#allocation14_spill]]  ;;  %s3147_s26 = scalar_lea.sflag [#allocation6], %s4092_s19 }
 0x137   : > { %1208 = vst.msk [vmem:[#allocation2 + $0xe] sm:$0x1] %vm528_vm6, %v1204_v43  ;;  %v1537_v51 = vrot.slane %v1527_v45, %v4343_v47  ;;  %v1640_v54 = vadd.f32 %v1639_v52, %v4341_v16  ;;  %v403_v43 = vld [vmem:[%s4612_s20] sm:$0xff]  ;;  %s3737_s20 = sshll.u32 %s3868_s27, 4  ;;  %s3738_s20 = int_to_ptr.vmem [resolvable:$false] %s3737_s20 }
 0x138   : > { %v1424_v49 = vcombine.high %v1423_v44, %v1423_v44  ;;  %v1431_v50 = vrot.slane %v1423_v44, %v4343_v47  ;;  %v1317_v53 = vrot.slane %v1303_v37, %v4343_v47  ;;  %1320 = vst.msk [vmem:[#allocation2 + $0x7] sm:$0x1] %vm528_vm6, %v1310_v46  ;;  %v1752_v58 = vpop.f32.mrf.mxu1  ;;  %v3469_v59 = vpop.f32.mrf.mxu0  ;;  %3501 = vmatpush3.msra.mxu1 %v403_v43  ;;  %p3740_p0 = scmp.lt.s32.totalorder %s4497_s25, %s3738_s20 }
 0x139   : > { %v1538_v56 = vcombine.high %v1537_v51, %v1537_v51  ;;  %v1545_v57 = vrot.slane %v1537_v51, %v4343_v47  ;;  %v1650_v60 = vrot.slane %v1640_v54, %v4343_v47  ;;  %v1753_v61 = vadd.f32 %v1752_v58, %v4341_v16  ;;  %3510 = vmatprep.subr.mxu1 %v3864_v0 }
 0x13a   : > { %v1438_v55 = vrot.slane %v1424_v49, %v4343_v47  ;;  %1442 = vst.msk [vmem:[#allocation3] sm:$0x1] %vm1441_vm7, %v1431_v50  ;;  %v3474_v63 = vpop.f32.mrf.mxu1  ;;  %v1865_v1 = vpop.f32.mrf.mxu0 }
 0x13b   : > { %1321 = vst.msk [vmem:[#allocation2 + $0xf] sm:$0x1] %vm528_vm6, %v1317_v53  ;;  %v1552_v62 = vrot.slane %v1538_v56, %v4343_v47  ;;  %v1651_v2 = vcombine.high %v1650_v60, %v1650_v60  ;;  %v1658_v3 = vrot.slane %v1650_v60, %v4343_v47  ;;  %v1763_v4 = vrot.slane %v1753_v61, %v4343_v47 }
 0x13c   : > { %1443 = vst.msk [vmem:[#allocation3 + $0x8] sm:$0x1] %vm1441_vm7, %v1438_v55  ;;  %1555 = vst.msk [vmem:[#allocation3 + $0x1] sm:$0x1] %vm1441_vm7, %v1545_v57  ;;  %v1866_v5 = vadd.f32 %v1865_v1, %v4341_v16  ;;  %v1978_v6 = vpop.f32.mrf.mxu1  ;;  %v3479_v7 = vpop.f32.mrf.mxu0  ;;  %s3354_s21 = sshll.u32 %s4613_s11, 3  ;;  %s3739_s11 = scalar_lea.vmem %s3738_s20, 1024 }
 0x13d   : > { %1556 = vst.msk [vmem:[#allocation3 + $0x9] sm:$0x1] %vm1441_vm7, %v1552_v62  ;;  %v1665_v8 = vrot.slane %v1651_v2, %v4343_v47  ;;  %1668 = vst.msk [vmem:[#allocation3 + $0x2] sm:$0x1] %vm1441_vm7, %v1658_v3  ;;  %v1764_v9 = vcombine.high %v1763_v4, %v1763_v4  ;;  %v1771_v10 = vrot.slane %v1763_v4, %v4343_v47  ;;  %s3158_s8 = sadd.s32 %s4610_s12, %s3354_s21  ;;  %p3741_p3 = scmp.lt.s32.totalorder %s3739_s11, %s3733_s17 }
 0x13e   : > { %v1876_v11 = vrot.slane %v1866_v5, %v4343_v47  ;;  %v1979_v12 = vadd.f32 %v1978_v6, %v4341_v16  ;;  %v3484_v13 = vpop.f32.mrf.mxu1  ;;  %v2091_v14 = vpop.f32.mrf.mxu0  ;;  %s3355_s6 = sshll.u32 %s3158_s8, 7 }
 0x13f   : > { %1669 = vst.msk [vmem:[#allocation3 + $0xa] sm:$0x1] %vm1441_vm7, %v1665_v8  ;;  %v1778_v15 = vrot.slane %v1764_v9, %v4343_v47  ;;  %1781 = vst.msk [vmem:[#allocation3 + $0x3] sm:$0x1] %vm1441_vm7, %v1771_v10  ;;  %v2092_v19 = vadd.f32 %v2091_v14, %v4341_v16  ;;  %v2235_v58 = vld [vmem:[#allocation2] sm:$0xff]  ;;  %v3338_v14 = vld [vmem:[%s4098_s22 + $0x8] sm:$0xff]  ;;  %s4502_s24 = scalar_lea.hbm %s4615_s0, %s3355_s6  ;;  %p3742_p10 = por %p3741_p3, %p3740_p0 }
 0x140   : > { %v1877_v17 = vcombine.high %v1876_v11, %v1876_v11  ;;  %v1884_v18 = vrot.slane %v1876_v11, %v4343_v47  ;;  %v1989_v20 = vrot.slane %v1979_v12, %v4343_v47  ;;  %v2204_v21 = vpop.f32.mrf.mxu1  ;;  %v3489_v22 = vpop.f32.mrf.mxu0  ;;  %v3348_v12 = vld [vmem:[%s4098_s22 + $0x18] sm:$0xff]  ;;  %v2540_v13 = vld [vmem:[%s4098_s22] sm:$0xff] }
 0x141   : > { %1782 = vst.msk [vmem:[#allocation3 + $0xb] sm:$0x1] %vm1441_vm7, %v1778_v15  ;;  %v2102_v24 = vrot.slane %v2092_v19, %v4343_v47  ;;  %v2205_v25 = vadd.f32 %v2204_v21, %v4341_v16  ;;  %v3343_v15 = vld [vmem:[%s4098_s22 + $0x10] sm:$0xff]  ;;  %p3743_p2 = pnand %p3742_p10, %p3736_p6 }
 0x142   : > { %v1891_v23 = vrot.slane %v1877_v17, %v4343_v47  ;;  %1894 = vst.msk [vmem:[#allocation3 + $0x4] sm:$0x1] %vm1441_vm7, %v1884_v18  ;;  %v1990_v26 = vcombine.high %v1989_v20, %v1989_v20  ;;  %v1997_v27 = vrot.slane %v1989_v20, %v4343_v47  ;;  %v3494_v28 = vpop.f32.mrf.mxu1  ;;  %v2386_v59 = vld [vmem:[#allocation2 + $0x8] sm:$0xff] }
 0x143   : > { %v2103_v29 = vcombine.high %v2102_v24, %v2102_v24  ;;  %v2110_v30 = vrot.slane %v2102_v24, %v4343_v47  ;;  %v2215_v31 = vrot.slane %v2205_v25, %v4343_v47 }
 0x144   : > { %1895 = vst.msk [vmem:[#allocation3 + $0xc] sm:$0x1] %vm1441_vm7, %v1891_v23  ;;  %v2004_v32 = vrot.slane %v1990_v26, %v4343_v47  ;;  %2007 = vst.msk [vmem:[#allocation3 + $0x5] sm:$0x1] %vm1441_vm7, %v1997_v27 }
 0x145   : > { %v2117_v33 = vrot.slane %v2103_v29, %v4343_v47  ;;  %2120 = vst.msk [vmem:[#allocation3 + $0x6] sm:$0x1] %vm1441_vm7, %v2110_v30  ;;  %v2216_v16 = vcombine.high %v2215_v31, %v2215_v31  ;;  %v2223_v34 = vrot.slane %v2215_v31, %v4343_v47 }
 0x146   : > { %2008 = vst.msk [vmem:[#allocation3 + $0xd] sm:$0x1] %vm1441_vm7, %v2004_v32 }
 0x147   : > { %2121 = vst.msk [vmem:[#allocation3 + $0xe] sm:$0x1] %vm1441_vm7, %v2117_v33  ;;  %v2230_v35 = vrot.slane %v2216_v16, %v4343_v47  ;;  %2233 = vst.msk [vmem:[#allocation3 + $0x7] sm:$0x1] %vm1441_vm7, %v2223_v34 }
 0x149   : > { %2234 = vst.msk [vmem:[#allocation3 + $0xf] sm:$0x1] %vm1441_vm7, %v2230_v35 }
 0x14e   : > { %v2236_v38 = vld [vmem:[#allocation3] sm:$0xff] }
 0x14f   : > { %3496 = vmatpush3.msra.mxu0 %v2236_v38 }
 0x150   : > { %3498 = vmatmul.mubr.msk.f32.vlgmr.msra.gmra.mxu0 %vm2237_vm8, %v402_v36  ;;  %3505 = vmatprep.subr.mxu0 %v3864_v0  ;;  %v2388_v47 = vld [vmem:[#allocation3 + $0x8] sm:$0xff] }
 0x151   : > { %3506 = vmatpush3.msra.mxu0 %v2388_v47  ;;  %3507 = vmatprep.mubr.msk.f32.mxu0 %vm3865_vm0, %v3864_v0 }
 0x152   : > { %3515 = vmatprep.subr.mxu0 %v3864_v0 }
 0x154   : > { %3508 = vmatmul.mubr.msk.f32.vlgmr.msra.gmra.mxu0 %vm2237_vm8, %v402_v36 }
 0x155   : > { %3516 = vmatpush3.msra.mxu0 %v2541_v39  ;;  %3517 = vmatprep.mubr.msk.f32.mxu0 %vm3865_vm0, %v3864_v0 }
 0x156   : > { %3525 = vmatprep.subr.mxu0 %v3864_v0 }
 0x158   : > { %3518 = vmatmul.mubr.msk.f32.vlgmr.msra.gmra.mxu0 %vm2237_vm8, %v402_v36 }
 0x159   : > { %3526 = vmatpush3.msra.mxu0 %v3339_v40  ;;  %3527 = vmatprep.mubr.msk.f32.mxu0 %vm3865_vm0, %v3864_v0 }
 0x15a   : > { %3535 = vmatprep.subr.mxu0 %v3864_v0 }
 0x15c   : > { %3528 = vmatmul.mubr.msk.f32.vlgmr.msra.gmra.mxu0 %vm2237_vm8, %v402_v36 }
 0x15d   : > { %3536 = vmatpush3.msra.mxu0 %v3344_v41  ;;  %3537 = vmatprep.mubr.msk.f32.mxu0 %vm3865_vm0, %v3864_v0 }
 0x15e   : > { %3545 = vmatprep.subr.mxu0 %v3864_v0 }
 0x160   : > { %3538 = vmatmul.mubr.msk.f32.vlgmr.msra.gmra.mxu0 %vm2237_vm8, %v402_v36 }
 0x161   : > { %3546 = vmatpush3.msra.mxu0 %v3349_v42  ;;  %3547 = vmatprep.mubr.msk.f32.mxu0 %vm3865_vm0, %v3864_v0 }
 0x164   : > { %3548 = vmatmul.mubr.msk.f32.vlgmr.msra.gmra.mxu0 %vm2237_vm8, %v402_v36 }
 0x210   : > { %v2307_v44 = vpop.f32.mrf.mxu0 }
 0x211   : > { %3503 = vmatmul.mubr.msk.f32.vlgmr.msra.gmra.mxu1 %vm2237_vm8, %v2307_v44 }
 0x212   : > { %v3499_v45 = vpop.f32.mrf.mxu0  ;;  %3511 = vmatpush3.msra.mxu1 %v403_v43  ;;  %3512 = vmatprep.mubr.msk.f32.mxu1 %vm3865_vm0, %v3864_v0 }
 0x213   : > { %3520 = vmatprep.subr.mxu1 %v3864_v0 }
 0x214   : > { %v2455_v37 = vpop.f32.mrf.mxu0 }
 0x215   : > { %3513 = vmatmul.mubr.msk.f32.vlgmr.msra.gmra.mxu1 %vm2237_vm8, %v2455_v37 }
 0x216   : > { %v3509_v46 = vpop.f32.mrf.mxu0  ;;  %3521 = vmatpush3.msra.mxu1 %v403_v43  ;;  %3522 = vmatprep.mubr.msk.f32.mxu1 %vm3865_vm0, %v3864_v0 }
 0x217   : > { %3530 = vmatprep.subr.mxu1 %v3864_v0 }
 0x218   : > { %v2608_v48 = vpop.f32.mrf.mxu0 }
 0x219   : > { %3523 = vmatmul.mubr.msk.f32.vlgmr.msra.gmra.mxu1 %vm2237_vm8, %v2608_v48 }
 0x21a   : > { %v3519_v49 = vpop.f32.mrf.mxu0  ;;  %3531 = vmatpush3.msra.mxu1 %v403_v43  ;;  %3532 = vmatprep.mubr.msk.f32.mxu1 %vm3865_vm0, %v3864_v0 }
 0x21b   : > { %3540 = vmatprep.subr.mxu1 %v3864_v0 }
 0x21c   : > { %v2760_v50 = vpop.f32.mrf.mxu0 }
 0x21d   : > { %3533 = vmatmul.mubr.msk.f32.vlgmr.msra.gmra.mxu1 %vm2237_vm8, %v2760_v50 }
 0x21e   : > { %v3529_v51 = vpop.f32.mrf.mxu0  ;;  %3541 = vmatpush3.msra.mxu1 %v403_v43  ;;  %3542 = vmatprep.mubr.msk.f32.mxu1 %vm3865_vm0, %v3864_v0 }
 0x21f   : > { %3550 = vmatprep.subr.mxu1 %v3864_v0 }
 0x220   : > { %v2912_v52 = vpop.f32.mrf.mxu0 }
 0x221   : > { %3543 = vmatmul.mubr.msk.f32.vlgmr.msra.gmra.mxu1 %vm2237_vm8, %v2912_v52 }
 0x222   : > { %v3539_v53 = vpop.f32.mrf.mxu0  ;;  %3551 = vmatpush3.msra.mxu1 %v403_v43  ;;  %3552 = vmatprep.mubr.msk.f32.mxu1 %vm3865_vm0, %v3864_v0 }
 0x224   : > { %v3064_v54 = vpop.f32.mrf.mxu0 }
 0x225   : > { %3553 = vmatmul.mubr.msk.f32.vlgmr.msra.gmra.mxu1 %vm2237_vm8, %v3064_v54 }
 0x226   : > { %v3549_v55 = vpop.f32.mrf.mxu0 }
 0x2d1   : > { %v2380_v56 = vpop.f32.mrf.mxu1 }
 0x2d2   : > { %v2384_v61 = vmul.f32 %v2380_v56, %v2235_v58 }
 0x2d3   : > { %v3504_v57 = vpop.f32.mrf.mxu1 }
 0x2d5   : > { %v2528_v60 = vpop.f32.mrf.mxu1 }
 0x2d6   : > { %v2532_v62 = vmul.f32 %v2528_v60, %v2386_v59 }
 0x2d7   : > { %v3514_v63 = vpop.f32.mrf.mxu1 }
 0x2d8   : > { %v2533_v1 = vadd.f32 %v2532_v62, %v2384_v61 }
 0x2d9   : > { %v2681_v2 = vpop.f32.mrf.mxu1 }
 0x2da   : > { %v3335_v3 = vmul.f32 -1.442695, %v2533_v1  ;;  %v2685_v18 = vsub.f32 %v2681_v2, %v2540_v13 }
 0x2db   : > { %v3524_v0 = vpop.f32.mrf.mxu1 }
 0x2dc   : > { %3673 = vpow2.f32 %v3335_v3 }
 0x2dd   : > { %v2833_v4 = vpop.f32.mrf.mxu1 }
 0x2de   : > { %v2837_v19 = vsub.f32 %v2833_v4, %v3338_v14 }
 0x2df   : > { %v3534_v5 = vpop.f32.mrf.mxu1 }
 0x2e1   : > { %v2985_v6 = vpop.f32.mrf.mxu1 }
 0x2e2   : > { %v2989_v20 = vsub.f32 %v2985_v6, %v3343_v15 }
 0x2e3   : > { %v3544_v7 = vpop.f32.mrf.mxu1 }
 0x2e5   : > { %v3137_v8 = vpop.f32.mrf.mxu1 }
 0x2e6   : > { %v3141_v17 = vsub.f32 %v3137_v8, %v3348_v12 }
 0x2e7   : > { %v3554_v9 = vpop.f32.mrf.mxu1 }
 0x2e9   : > { %v3674_v10 = vpop.eup %3673 }
 0x2ea   : > { %v2537_v11 = vadd.f32 1.0, %v3674_v10 }
 0x2ec   : > { %3675 = vrcp.f32 %v2537_v11 }
 0x2f9   : > { %v3676_v21 = vpop.eup %3675 }
 0x2fa   : > { %v2686_v22 = vmul.f32 %v3676_v21, %v2685_v18  ;;  %v2838_v23 = vmul.f32 %v3676_v21, %v2837_v19  ;;  %v2990_v24 = vmul.f32 %v3676_v21, %v2989_v20  ;;  %v3142_v25 = vmul.f32 %v3676_v21, %v3141_v17 }
 0x2fc   : > { %v2687_v26 = vadd.f32 %v2686_v22, %v2540_v13  ;;  %v2839_v27 = vadd.f32 %v3338_v14, %v2838_v23  ;;  %v2991_v28 = vadd.f32 %v3343_v15, %v2990_v24  ;;  %v3143_v29 = vadd.f32 %v3348_v12, %v3142_v25 }
 0x2fe   : > { %2689 = vst.msk [vmem:[%s393_s23] sm:$0xff] %vm2688_vm9, %v2687_v26  ;;  %3342 = vst.msk [vmem:[%s393_s23 + $0x8] sm:$0xff] %vm2688_vm9, %v2839_v27 }
 0x2ff   : > { %3347 = vst.msk [vmem:[%s393_s23 + $0x10] sm:$0xff] %vm2688_vm9, %v2991_v28  ;;  %3352 = vst.msk [vmem:[%s393_s23 + $0x18] sm:$0xff] %vm2688_vm9, %v3143_v29 }
 0x300   : > { %3746 = shalt.err (!%p3743_p2)
}
 0x301   : > { %s3747_s21 = scalar_lea.hbm %s4502_s24, 512  ;;  %s3751_s6 = scalar_lea.hbm %s4615_s0, 2048 }
 0x302   : > { %p3748_p1 = scmp.ne.s32.totalorder %s4502_s24, %s3747_s21  ;;  %p3752_p13 = scmp.lt.s32.totalorder %s4502_s24, %s4615_s0 }
 0x303   : > { %p3753_p11 = scmp.lt.s32.totalorder %s3751_s6, %s3747_s21 }
 0x304   : > { %p3749_p4 = pnand %p3748_p1, %p4616_p12 }
 0x305   : > { %p3754_p8 = por %p3753_p11, %p3752_p13 }
 0x306   : > { %p3750_p7 = pneg %p3749_p4 }
 0x308   : > { %p3755_p9 = pnand %p3754_p8, %p3750_p7 }
 0x30a   : > { %3758 = shalt.err (!%p3755_p9)
}
 0x30b   : > { %s3869_s17 = smov 128   ;;  %s3870_s27 = smov 256  }
 0x30c   : > { %s3871_s20 = smov 8  }
 0x30d   : > { %3559 = dma.vmem_to_hbm [thread:$0]  (%p4616_p12), %s4497_s25, 512, %s4502_s24, %s3147_s26, %s3869_s17, %s3870_s27, %s3871_s20  }
 0x30e PF: > { %s4617_s11 = sld [smem:[#allocation18_spill]]  ;;  %p3573_p5 = scmp.ge.s32.totalorder %s3857_s15, 2 }
 0x30f   : > { %s3176_s8 = sand.u32 1, %s3829_s30  }
 0x310   : > { %s3177_s21 = scalar_lea.sflag [#allocation6], %s3176_s8 }
 0x314   : > { %p4618_p6 = scmp.ne.s32.totalorder %s4617_s11, 0 }
 0x316   : > { %p3569_p0 = pnand %p3573_p5, %p4618_p6 }
 0x318   : > { %p3570_p3 = pneg %p3569_p0 }
 0x31a   : > { %3812 = dma.done.wait (%p3570_p3), %s3177_s21, 512  }
 0x31b   : > { %3814 = vsyncadd (%p3570_p3), %s3177_s21, 4294966784  ;;  %s27_s15 = sadd.s32 1, %s3857_s15   ;;  %s4619_s19 = sld [smem:[#allocation15_spill]] }
 0x31c   : > { %p24_p10 = scmp.ge.s32.totalorder %s27_s15, 6   ;;  %s4620_s25 = sld [smem:[#allocation16_spill]] }
 0x31d   : > { %s4621_s27 = smov %s3821_s28  ;;  %s4622_s28 = smov %s3825_s29 }
 0x31e   : > { %s4623_s29 = smov %s4052_s16  ;;  %s4624_s30 = smov %s3833_s9 }
 0x31f   : > { %s4625_s9 = smov %s3837_s10  ;;  %s4626_s10 = smov %s4018_s18 }
 0x320   : > { %s4627_s11 = smov %s3849_s13  ;;  %s4628_s12 = smov %s3853_s14 }
 0x321   : > { %s4629_s13 = smov %s4619_s19  ;;  %26 = sbr.rel (!%p24_p10) target bundleno = 16 (0x10), region = 124 }
 0x322   : > { %s4630_s14 = smov %s4620_s25 }
 0x326   :  { %3182 = vsyncpa [#allocation5], 1 }
 0x327   :  { %3184 = vsyncpa [#allocation5 + $0x1], 1 }
 0x328   :  { %3185 = vsyncpa [#allocation8], 1 }
 0x329   :  { %3187 = vsyncpa [#allocation8 + $0x1], 1 }
 0x32a   :  { %3188 = vsyncpa [#allocation6], 1 }
 0x32b   :  { %3190 = vsyncpa [#allocation6 + $0x1], 1 }

</bundles_post_ra>
